<compile_context>
chip_gen: v5e
topology: v5e:2x2
jax: 0.10.0
libtpu: 0.0.40
codegen_flags: <defaults>
</compile_context>

<pallas_src>
import jax
import jax.numpy as jnp
import numpy as np
from jax.experimental import pallas as pl
from jax.experimental.pallas import tpu as pltpu

LANE = 128        # lane width; all feature dims zero-padded to a multiple of this
NODE_TILE = 256   # dst-node rows per grid step (SAGE layer)            ["parallel"]
SRC_TILE = 512    # src-node contraction columns per grid step (SAGE)   ["arbitrary"]
EDGE_TILE = 512   # edges per grid step (edge predictor)                ["parallel"]


def _round_up(x, m):
    return (x + m - 1) // m * m


def _pad2(a, rows, cols):
    return jnp.pad(a, ((0, rows - a.shape[0]), (0, cols - a.shape[1])))


# ---------------------------------------------------------------------------
# Kernel 1: one SAGEConv('mean') layer.
#   out = x_dst @ W_self + ((A_count @ x_src) * invdeg) @ W_neigh + bias
# grid = (dst-node tiles [parallel], src-node contraction tiles [arbitrary]).
# ---------------------------------------------------------------------------
def _sage_kernel(adj_ref, invdeg_ref, xs_ref, xd_ref, ws_ref, wn_ref, b_ref,
                 o_ref, acc_ref):
    k = pl.program_id(1)

    @pl.when(k == 0)
    def _():
        acc_ref[...] = jnp.zeros_like(acc_ref)

    # int8 raw edge counts -> bf16 on the fly (halves the dominant HBM stream); the per-row
    # 1/deg scale is applied in f32 at finalize, outside the matmul (exact mean semantics).
    adj = adj_ref[...].astype(jnp.int32).astype(jnp.float32).astype(jnp.bfloat16)
    acc_ref[...] += jnp.dot(adj, xs_ref[...], preferred_element_type=jnp.float32)

    @pl.when(k == pl.num_programs(1) - 1)
    def _():
        neigh = (acc_ref[...] * invdeg_ref[...]).astype(jnp.bfloat16)
        out = (jnp.dot(xd_ref[...], ws_ref[...], preferred_element_type=jnp.float32)
               + jnp.dot(neigh, wn_ref[...], preferred_element_type=jnp.float32)
               + b_ref[...])
        o_ref[...] = out.astype(o_ref.dtype)


def sage_layer(adj_i8, invdeg, x_b, w_self, w_neigh, bias, *,
               out_dtype=jnp.bfloat16, tn=NODE_TILE, tk=SRC_TILE):
    """adj_i8: (N,N) int8 edge counts; invdeg: (N,1) f32; x_b: (N,F) bf16;
    w_self/w_neigh: (F,Fo) bf16; bias: (1,Fo) f32 -> (N,Fo) out_dtype."""
    n = adj_i8.shape[0]
    f_in = x_b.shape[1]
    f_out = w_self.shape[1]
    assert n % tn == 0 and n % tk == 0
    grid = (n // tn, n // tk)
    flops = 2 * n * n * f_in + 4 * n * f_in * f_out
    bytes_accessed = (adj_i8.size + 2 * x_b.size * 2
                      + (w_self.size + w_neigh.size) * 2 + bias.size * 4
                      + invdeg.size * 4 + n * f_out * np.dtype(out_dtype).itemsize)
    # NOTE: weight/bias blocks have constant index maps; pipeline_mode=pl.Buffered(1) would
    # trim their double-buffering, skipped here to keep the build maximally portable.
    return pl.pallas_call(
        _sage_kernel,
        out_shape=jax.ShapeDtypeStruct((n, f_out), out_dtype),
        grid_spec=pltpu.PrefetchScalarGridSpec(
            num_scalar_prefetch=0,
            grid=grid,
            in_specs=[
                pl.BlockSpec((tn, tk), lambda i, k: (i, k)),        # int8 edge-count tile
                pl.BlockSpec((tn, 1), lambda i, k: (i, 0)),         # per-dst-row 1/deg (f32)
                pl.BlockSpec((tk, f_in), lambda i, k: (k, 0)),      # x, src rows (aggregation)
                pl.BlockSpec((tn, f_in), lambda i, k: (i, 0)),      # x, dst rows (self term)
                pl.BlockSpec((f_in, f_out), lambda i, k: (0, 0)),   # W_self (bf16)
                pl.BlockSpec((f_in, f_out), lambda i, k: (0, 0)),   # W_neigh (bf16)
                pl.BlockSpec((1, f_out), lambda i, k: (0, 0)),      # bias (f32)
            ],
            out_specs=pl.BlockSpec((tn, f_out), lambda i, k: (i, 0)),
            scratch_shapes=[pltpu.VMEM((tn, f_in), jnp.float32)],
        ),
        compiler_params=pltpu.CompilerParams(
            dimension_semantics=("parallel", "arbitrary"),
            vmem_limit_bytes=32 * 1024 * 1024,
        ),
        cost_estimate=pl.CostEstimate(flops=int(flops), transcendentals=0,
                                      bytes_accessed=int(bytes_accessed)),
    )(adj_i8, invdeg, x_b, x_b, w_self, w_neigh, bias)


# ---------------------------------------------------------------------------
# Kernel 2: per-edge dot product of endpoint embeddings (fully vectorised).
# The node embedding table is kept transposed (features on sublanes, nodes on lanes, bf16).
# Per edge tile, a one-hot selection matrix is built IN-KERNEL from iota + the int32 edge
# endpoints (never materialised in HBM) and the endpoint rows are gathered with two MXU
# matmuls; the score is a cross-sublane reduce written as a lane-dense (1, te) block.
# ---------------------------------------------------------------------------
def _edge_dot_kernel(src_ref, dst_ref, ht_ref, out_ref):
    n = ht_ref.shape[1]
    te = src_ref.shape[1]
    node_ids = jax.lax.broadcasted_iota(jnp.int32, (n, te), 0)
    sel_s = jnp.where(src_ref[...] == node_ids, 1.0, 0.0).astype(jnp.bfloat16)  # (n, te)
    sel_d = jnp.where(dst_ref[...] == node_ids, 1.0, 0.0).astype(jnp.bfloat16)  # (n, te)
    hu = jnp.dot(ht_ref[...], sel_s, preferred_element_type=jnp.float32)        # (f, te)
    hv = jnp.dot(ht_ref[...], sel_d, preferred_element_type=jnp.float32)        # (f, te)
    out_ref[...] = jnp.sum(hu * hv, axis=0, keepdims=True)                      # (1, te)


def edge_dot_scores(h_t, src2d, dst2d, *, te=EDGE_TILE):
    """h_t: (F_pad, N_pad) bf16 transposed embeddings; src2d/dst2d: (1, E_pad) int32
    -> (E_pad//te, 1, te) f32 raw scores (lane-dense blocks)."""
    f, n = h_t.shape
    e_pad = src2d.shape[1]
    assert e_pad % te == 0
    n_tiles = e_pad // te
    flops = 4 * e_pad * n * f + 3 * e_pad * f
    bytes_accessed = h_t.size * 2 + e_pad * 8 + e_pad * 4
    return pl.pallas_call(
        _edge_dot_kernel,
        out_shape=jax.ShapeDtypeStruct((n_tiles, 1, te), jnp.float32),
        grid_spec=pltpu.PrefetchScalarGridSpec(
            num_scalar_prefetch=0,
            grid=(n_tiles,),
            in_specs=[
                pl.BlockSpec((1, te), lambda i: (0, i)),   # src node ids for this edge tile
                pl.BlockSpec((1, te), lambda i: (0, i)),   # dst node ids for this edge tile
                pl.BlockSpec((f, n), lambda i: (0, 0)),    # transposed bf16 embedding table
            ],
            out_specs=pl.BlockSpec((None, 1, te), lambda i: (i, 0, 0)),
        ),
        compiler_params=pltpu.CompilerParams(
            dimension_semantics=("parallel",),
            vmem_limit_bytes=32 * 1024 * 1024,
        ),
        cost_estimate=pl.CostEstimate(flops=int(flops), transcendentals=0,
                                      bytes_accessed=int(bytes_accessed)),
    )(src2d, dst2d, h_t)


# ---------------------------------------------------------------------------
# Model wrapper
# ---------------------------------------------------------------------------
def model_forward(counts, invdeg, x, params, src_idx, dst_idx):
    """Full forward pass: 2x SAGEConv(mean) -> per-edge dot -> global min-max normalisation."""
    bf16 = jnp.bfloat16
    n = counts.shape[0]
    e = src_idx.shape[0]
    f_in, f_hid = params["w1_self"].shape
    f_out = params["w2_self"].shape[1]

    n_pad = _round_up(n, max(NODE_TILE, SRC_TILE))
    e_pad = _round_up(e, EDGE_TILE)
    f_in_p = _round_up(f_in, LANE)
    f_hid_p = _round_up(f_hid, LANE)
    f_out_p = _round_up(f_out, LANE)

    # Dense raw edge counts as int8 (half the HBM bytes of bf16); per-row 1/deg kept in f32.
    # TODO(synk): int8 overflows if a single (dst, src) pair carries >127 parallel edges.
    adj_i8 = _pad2(counts, n_pad, n_pad).astype(jnp.int8)
    invdeg_p = _pad2(invdeg, n_pad, 1).astype(jnp.float32)
    x_b = _pad2(x, n_pad, f_in_p).astype(bf16)

    w1s = _pad2(params["w1_self"], f_in_p, f_hid_p).astype(bf16)
    w1n = _pad2(params["w1_neigh"], f_in_p, f_hid_p).astype(bf16)
    b1 = _pad2(params["b1"], 1, f_hid_p).astype(jnp.float32)
    w2s = _pad2(params["w2_self"], f_hid_p, f_out_p).astype(bf16)
    w2n = _pad2(params["w2_neigh"], f_hid_p, f_out_p).astype(bf16)
    b2 = _pad2(params["b2"], 1, f_out_p).astype(jnp.float32)

    # Two SAGE layers; bf16 outputs halve the inter-layer HBM round trip.
    h1 = sage_layer(adj_i8, invdeg_p, x_b, w1s, w1n, b1, out_dtype=bf16)   # (n_pad, f_hid_p)
    h2 = sage_layer(adj_i8, invdeg_p, h1, w2s, w2n, b2, out_dtype=bf16)    # (n_pad, f_out_p)

    # Edge predictor on the transposed (lane-dense) embedding table.
    h2_t = h2.T                                                            # (f_out_p, n_pad)
    src_p = jnp.pad(src_idx.astype(jnp.int32), (0, e_pad - e)).reshape(1, e_pad)
    dst_p = jnp.pad(dst_idx.astype(jnp.int32), (0, e_pad - e)).reshape(1, e_pad)
    raw = edge_dot_scores(h2_t, src_p, dst_p).reshape(-1)[:e]              # (E,)

    # Global min-max normalisation, hoisted out of the kernel (edges stay tileable).
    mn = jnp.min(raw)
    mx = jnp.max(raw)
    denom = jnp.where(mx > mn, mx - mn, jnp.float32(1.0))                  # guard all-equal
    return ((raw - mn) / denom)[:, None]                                   # (E, 1)


# ---------------------------------------------------------------------------
# Graph / parameter construction and pure-JAX reference
# ---------------------------------------------------------------------------
def build_graph_matrices(num_nodes, src, dst):
    """Dense raw edge-count matrix counts[v,u] = #edges u->v, and per-row 1/in_degree."""
    counts = jnp.zeros((num_nodes, num_nodes), jnp.float32).at[dst, src].add(1.0)
    deg = jnp.sum(counts, axis=1, keepdims=True)
    invdeg = 1.0 / jnp.maximum(deg, 1.0)
    return counts, invdeg


def init_params(key, in_feats, hid_feats, out_feats):
    ks = jax.random.split(key, 4)
    s1 = 1.0 / np.sqrt(in_feats)
    s2 = 1.0 / np.sqrt(hid_feats)
    return {
        "w1_self":  jax.random.uniform(ks[0], (in_feats, hid_feats), jnp.float32, -s1, s1),
        "w1_neigh": jax.random.uniform(ks[1], (in_feats, hid_feats), jnp.float32, -s1, s1),
        "b1":       jnp.zeros((1, hid_feats), jnp.float32),
        "w2_self":  jax.random.uniform(ks[2], (hid_feats, out_feats), jnp.float32, -s2, s2),
        "w2_neigh": jax.random.uniform(ks[3], (hid_feats, out_feats), jnp.float32, -s2, s2),
        "b2":       jnp.zeros((1, out_feats), jnp.float32),
    }


def reference_forward(counts, invdeg, x, params, src, dst):
    """Pure-JAX reference mirroring the kernel's bf16-input / f32-accumulate numerics."""
    bf16 = jnp.bfloat16
    a_b = counts.astype(bf16)                      # small integer counts are exact in bf16
    x_b = x.astype(bf16)
    w1s, w1n = params["w1_self"].astype(bf16), params["w1_neigh"].astype(bf16)
    w2s, w2n = params["w2_self"].astype(bf16), params["w2_neigh"].astype(bf16)

    neigh1 = (jnp.dot(a_b, x_b, preferred_element_type=jnp.float32) * invdeg).astype(bf16)
    h1 = (jnp.dot(x_b, w1s, preferred_element_type=jnp.float32)
          + jnp.dot(neigh1, w1n, preferred_element_type=jnp.float32)
          + params["b1"]).astype(bf16)
    neigh2 = (jnp.dot(a_b, h1, preferred_element_type=jnp.float32) * invdeg).astype(bf16)
    h2 = (jnp.dot(h1, w2s, preferred_element_type=jnp.float32)
          + jnp.dot(neigh2, w2n, preferred_element_type=jnp.float32)
          + params["b2"]).astype(bf16)

    h2f = h2.astype(jnp.float32)
    lab = jnp.sum(h2f[src] * h2f[dst], axis=-1)
    mn, mx = jnp.min(lab), jnp.max(lab)
    denom = jnp.where(mx > mn, mx - mn, jnp.float32(1.0))
    return ((lab - mn) / denom)[:, None]


if __name__ == "__main__":
    key = jax.random.PRNGKey(0)
    k_feat, k_param, k_src, k_dst = jax.random.split(key, 4)

    # Small synthetic graph / features.
    num_nodes, num_edges = 8, 16
    in_feats, hid_feats, out_feats = 16, 32, 8

    src = jax.random.randint(k_src, (num_edges,), 0, num_nodes, dtype=jnp.int32)
    dst = jax.random.randint(k_dst, (num_edges,), 0, num_nodes, dtype=jnp.int32)
    x = jax.random.normal(k_feat, (num_nodes, in_feats), jnp.float32)

    counts, invdeg = build_graph_matrices(num_nodes, src, dst)
    params = init_params(k_param, in_feats, hid_feats, out_feats)

    out = model_forward(counts, invdeg, x, params, src, dst)
    out = jax.block_until_ready(out)

    ref = reference_forward(counts, invdeg, x, params, src, dst)
    # bf16 MXU inputs (mirrored in the reference) + differing accumulation order loosen the
    # tolerance versus a pure-f32 path; outputs are min-max normalised to [0, 1].
    np.testing.assert_allclose(np.asarray(out), np.asarray(ref), rtol=2e-2, atol=2e-2)

    print("KERNEL_OK")
</pallas_src>

<mosaic_0001>
module attributes {stable_mosaic.version = 11 : i64} {
  func.func @_sage_kernel(%arg0: i32, %arg1: i32, %arg2: memref<256x512xi8, #tpu.memory_space<vmem>>, %arg3: memref<256x1xf32, #tpu.memory_space<vmem>>, %arg4: memref<512x128xbf16, #tpu.memory_space<vmem>>, %arg5: memref<256x128xbf16, #tpu.memory_space<vmem>>, %arg6: memref<128x128xbf16, #tpu.memory_space<vmem>>, %arg7: memref<128x128xbf16, #tpu.memory_space<vmem>>, %arg8: memref<1x128xf32, #tpu.memory_space<vmem>>, %arg9: memref<256x128xbf16, #tpu.memory_space<vmem>>, %arg10: memref<256x128xf32, #tpu.memory_space<vmem>>) attributes {dimension_semantics = [#tpu.dimension_semantics<parallel>, #tpu.dimension_semantics<arbitrary>], iteration_bounds = array<i64: 2, 1>, scalar_prefetch = 0 : i64, scratch_operands = 1 : i64, tpu.core_type = #tpu.core_type<tc>, window_params = [{transform_indices = @transform_0, window_bounds = array<i64: 256, 512>}, {transform_indices = @transform_1, window_bounds = array<i64: 256, 1>}, {transform_indices = @transform_2, window_bounds = array<i64: 512, 128>}, {transform_indices = @transform_3, window_bounds = array<i64: 256, 128>}, {pipeline_mode = #tpu.pipeline_mode<synchronous>, transform_indices = @transform_4, window_bounds = array<i64: 128, 128>}, {pipeline_mode = #tpu.pipeline_mode<synchronous>, transform_indices = @transform_5, window_bounds = array<i64: 128, 128>}, {pipeline_mode = #tpu.pipeline_mode<synchronous>, transform_indices = @transform_6, window_bounds = array<i64: 1, 128>}, {transform_indices = @transform_7, window_bounds = array<i64: 256, 128>}]} {
    %c0_i32 = arith.constant 0 : i32
    %0 = arith.cmpi eq, %arg1, %c0_i32 : i32
    %1 = arith.extui %0 : i1 to i32
    %c0_i32_0 = arith.constant 0 : i32
    %2 = arith.cmpi ne, %1, %c0_i32_0 : i32
    scf.if %2 {
      %cst_10 = arith.constant 0.000000e+00 : f32
      %15 = vector.broadcast %cst_10 : f32 to vector<256x128xf32>
      %c0_11 = arith.constant 0 : index
      %c0_12 = arith.constant 0 : index
      %16 = vector.load %arg10[%c0_11, %c0_12] : memref<256x128xf32, #tpu.memory_space<vmem>>, vector<256x128xf32>
      tpu.vector_store %arg10[%c0_11, %c0_12], %15 {strides = array<i32>} : memref<256x128xf32, #tpu.memory_space<vmem>>, vector<256x128xf32>,
    } else {
    }
    %c0 = arith.constant 0 : index
    %c0_1 = arith.constant 0 : index
    %3 = vector.load %arg2[%c0, %c0_1] : memref<256x512xi8, #tpu.memory_space<vmem>>, vector<256x512xi8>
    %4 = arith.extsi %3 : vector<256x512xi8> to vector<256x512xi32>
    %5 = arith.sitofp %4 : vector<256x512xi32> to vector<256x512xf32>
    %6 = arith.truncf %5 : vector<256x512xf32> to vector<256x512xbf16>
    %c0_2 = arith.constant 0 : index
    %c0_3 = arith.constant 0 : index
    %7 = vector.load %arg10[%c0_2, %c0_3] : memref<256x128xf32, #tpu.memory_space<vmem>>, vector<256x128xf32>
    %c0_4 = arith.constant 0 : index
    %c0_5 = arith.constant 0 : index
    %8 = vector.load %arg4[%c0_4, %c0_5] : memref<512x128xbf16, #tpu.memory_space<vmem>>, vector<512x128xbf16>
    %cst = arith.constant dense<0.000000e+00> : vector<256x128xf32>
    %9 = tpu.matmul %6, %8, %cst {dimension_numbers = #tpu.dot_dimension_numbers<[1], [0], [0], [1], [0, 0, 1, 1], [], []>} : vector<256x512xbf16>, vector<512x128xbf16>, vector<256x128xf32> -> vector<256x128xf32>
    %10 = arith.addf %7, %9 : vector<256x128xf32>
    %c0_6 = arith.constant 0 : index
    %c0_7 = arith.constant 0 : index
    %11 = vector.load %arg10[%c0_6, %c0_7] : memref<256x128xf32, #tpu.memory_space<vmem>>, vector<256x128xf32>
    tpu.vector_store %arg10[%c0_6, %c0_7], %10 {strides = array<i32>} : memref<256x128xf32, #tpu.memory_space<vmem>>, vector<256x128xf32>,
    %c0_i32_8 = arith.constant 0 : i32
    %12 = arith.cmpi eq, %arg1, %c0_i32_8 : i32
    %13 = arith.extui %12 : i1 to i32
    %c0_i32_9 = arith.constant 0 : i32
    %14 = arith.cmpi ne, %13, %c0_i32_9 : i32
    scf.if %14 {
      %c0_10 = arith.constant 0 : index
      %c0_11 = arith.constant 0 : index
      %15 = vector.load %arg10[%c0_10, %c0_11] : memref<256x128xf32, #tpu.memory_space<vmem>>, vector<256x128xf32>
      %c0_12 = arith.constant 0 : index
      %c0_13 = arith.constant 0 : index
      %16 = vector.load %arg3[%c0_12, %c0_13] : memref<256x1xf32, #tpu.memory_space<vmem>>, vector<256x1xf32>
      %17 = vector.broadcast %16 : vector<256x1xf32> to vector<256x128xf32>
      %18 = arith.mulf %15, %17 : vector<256x128xf32>
      %19 = arith.truncf %18 : vector<256x128xf32> to vector<256x128xbf16>
      %c0_14 = arith.constant 0 : index
      %c0_15 = arith.constant 0 : index
      %20 = vector.load %arg5[%c0_14, %c0_15] : memref<256x128xbf16, #tpu.memory_space<vmem>>, vector<256x128xbf16>
      %c0_16 = arith.constant 0 : index
      %c0_17 = arith.constant 0 : index
      %21 = vector.load %arg6[%c0_16, %c0_17] : memref<128x128xbf16, #tpu.memory_space<vmem>>, vector<128x128xbf16>
      %cst_18 = arith.constant dense<0.000000e+00> : vector<256x128xf32>
      %22 = tpu.matmul %20, %21, %cst_18 {dimension_numbers = #tpu.dot_dimension_numbers<[1], [0], [0], [1], [0, 0, 1, 1], [], []>} : vector<256x128xbf16>, vector<128x128xbf16>, vector<256x128xf32> -> vector<256x128xf32>
      %c0_19 = arith.constant 0 : index
      %c0_20 = arith.constant 0 : index
      %23 = vector.load %arg7[%c0_19, %c0_20] : memref<128x128xbf16, #tpu.memory_space<vmem>>, vector<128x128xbf16>
      %cst_21 = arith.constant dense<0.000000e+00> : vector<256x128xf32>
      %24 = tpu.matmul %19, %23, %cst_21 {dimension_numbers = #tpu.dot_dimension_numbers<[1], [0], [0], [1], [0, 0, 1, 1], [], []>} : vector<256x128xbf16>, vector<128x128xbf16>, vector<256x128xf32> -> vector<256x128xf32>
      %25 = arith.addf %22, %24 : vector<256x128xf32>
      %c0_22 = arith.constant 0 : index
      %c0_23 = arith.constant 0 : index
      %26 = vector.load %arg8[%c0_22, %c0_23] : memref<1x128xf32, #tpu.memory_space<vmem>>, vector<1x128xf32>
      %27 = vector.broadcast %26 : vector<1x128xf32> to vector<256x128xf32>
      %28 = arith.addf %25, %27 : vector<256x128xf32>
      %29 = arith.truncf %28 : vector<256x128xf32> to vector<256x128xbf16>
      %c0_24 = arith.constant 0 : index
      %c0_25 = arith.constant 0 : index
      %30 = vector.load %arg9[%c0_24, %c0_25] : memref<256x128xbf16, #tpu.memory_space<vmem>>, vector<256x128xbf16>
      tpu.vector_store %arg9[%c0_24, %c0_25], %29 {strides = array<i32>} : memref<256x128xbf16, #tpu.memory_space<vmem>>, vector<256x128xbf16>,
    } else {
    }
    return
  }
  func.func @transform_0(%arg0: i32, %arg1: i32) -> (i32, i32) {
    %c0_i32 = arith.constant 0 : i32
    return %arg0, %arg1 : i32, i32
  }
  func.func @transform_1(%arg0: i32, %arg1: i32) -> (i32, i32) {
    %c0_i32 = arith.constant 0 : i32
    %c0_i32_0 = arith.constant 0 : i32
    return %arg0, %c0_i32 : i32, i32
  }
  func.func @transform_2(%arg0: i32, %arg1: i32) -> (i32, i32) {
    %c0_i32 = arith.constant 0 : i32
    %c0_i32_0 = arith.constant 0 : i32
    return %arg1, %c0_i32 : i32, i32
  }
  func.func @transform_3(%arg0: i32, %arg1: i32) -> (i32, i32) {
    %c0_i32 = arith.constant 0 : i32
    %c0_i32_0 = arith.constant 0 : i32
    return %arg0, %c0_i32 : i32, i32
  }
  func.func @transform_4(%arg0: i32, %arg1: i32) -> (i32, i32) {
    %c0_i32 = arith.constant 0 : i32
    %c0_i32_0 = arith.constant 0 : i32
    %c0_i32_1 = arith.constant 0 : i32
    return %c0_i32, %c0_i32_0 : i32, i32
  }
  func.func @transform_5(%arg0: i32, %arg1: i32) -> (i32, i32) {
    %c0_i32 = arith.constant 0 : i32
    %c0_i32_0 = arith.constant 0 : i32
    %c0_i32_1 = arith.constant 0 : i32
    return %c0_i32, %c0_i32_0 : i32, i32
  }
  func.func @transform_6(%arg0: i32, %arg1: i32) -> (i32, i32) {
    %c0_i32 = arith.constant 0 : i32
    %c0_i32_0 = arith.constant 0 : i32
    %c0_i32_1 = arith.constant 0 : i32
    return %c0_i32, %c0_i32_0 : i32, i32
  }
  func.func @transform_7(%arg0: i32, %arg1: i32) -> (i32, i32) {
    %c0_i32 = arith.constant 0 : i32
    %c0_i32_0 = arith.constant 0 : i32
    return %arg0, %c0_i32 : i32, i32
  }
}

</mosaic_0001>

<bundles_post_ra>
// kernel: tpu_custom_call.1
= control target key start
LH: loop header
LB: loop body
LE: loop exit
PB: predicated region body
PF: predicated region fallthrough
CT: control target
= control target key end

     0   :  { %s3773_s0 = inlined_call_operand.vmem [shape: s8[512,512], index: 0, kind: input, shape index: {}]   ;;  %s3774_s1 = inlined_call_operand.vmem [shape: f32[512,1], index: 1, kind: input, shape index: {}]   ;;  %s3775_s2 = inlined_call_operand.hbm [shape: bf16[512,128], index: 2, kind: input, shape index: {}]   ;;  %s3776_s3 = inlined_call_operand.hbm [shape: bf16[512,128], index: 3, kind: input, shape index: {}]   ;;  %s3777_s4 = inlined_call_operand.hbm [shape: bf16[128,128], index: 4, kind: input, shape index: {}]   ;;  %s3778_s5 = inlined_call_operand.hbm [shape: bf16[128,128], index: 5, kind: input, shape index: {}]   ;;  %s3779_s6 = inlined_call_operand.vmem [shape: f32[1,128], index: 6, kind: input, shape index: {}]   ;;  %s3780_s7 = inlined_call_operand.hbm [shape: bf16[512,128], index: 7, kind: output, shape index: {}]  }
   0x1   :  { %3785 = sst [smem:[#allocation19_spill]] %s3775_s2 }
   0x2   :  { %3786 = sst [smem:[#allocation20_spill]] %s3777_s4 }
   0x3   :  { %3787 = sst [smem:[#allocation21_spill]] %s3778_s5 }
   0x4   :  { %12 = vsyncpa [#allocation4], 0 }
   0x5   :  { %13 = vsyncpa [#allocation7], 0 }
   0x6   :  { %15 = vsyncpa [#allocation7 + $0x1], 0 }
   0x7   :  { %16 = vsyncpa [#allocation10], 0 }
   0x8   :  { %17 = vsyncpa [#allocation5], 0 }
   0x9   :  { %19 = vsyncpa [#allocation5 + $0x1], 0  ;;  %s3326_s24 = smov 0   ;;  %s3328_s25 = smov 0  }
   0xa   :  { %s3330_s26 = smov 0   ;;  %s3332_s27 = smov 0  }
   0xb   :  { %s3334_s28 = smov 0   ;;  %s3336_s29 = smov 0  }
   0xc LB: > { %s3357_s30 = sadd.s32 4294967295, %s3276_s29   ;;  %s2501_s8 = sadd.s32 4294967294, %s3276_s29   ;;  %s3276_s29 = sphi %s3336_s29, %s25_s29   ;;  %s3272_s28 = sphi %s3334_s28, %s3807_s28   ;;  %s3268_s27 = sphi %s3332_s27, %s3806_s27   ;;  %s3264_s26 = sphi %s3330_s26, %s3805_s26   ;;  %s3260_s25 = sphi %s3328_s25, %s3804_s25   ;;  %s3256_s24 = sphi %s3326_s24, %s3803_s24  }
   0xd   : > { %p137_p0 = scmp.ne.s32.totalorder %s3260_s25, %s3256_s24  ;;  %p138_p1 = scmp.eq.s32.totalorder %s3357_s30, 0 }
   0xe   : > { %p224_p2 = scmp.eq.s32.totalorder %s3357_s30, 1  ;;  %p230_p3 = scmp.eq.s32.totalorder %s2501_s8, 1 }
   0xf   : > { %p3366_p4 = por %p138_p1, %p137_p0  ;;  %p2502_p5 = scmp.ge.s32.totalorder %s3276_s29, 1 }
  0x10   : > { %p3371_p6 = por %p230_p3, %p137_p0  ;;  %p237_p7 = scmp.lt.s32.totalorder %s3276_s29, 3 }
  0x11   : > { %s3792_s4 = sld [smem:[#allocation20_spill]]  ;;  %s3278_s15 = smov [#allocation8]  }
  0x12   : > { %s3789_s10 = scalar_select %p3371_p6, 1, 0 }
  0x13   : > { %p3376_p8 = pnand %p2502_p5, %p237_p7  ;;  %s267_s16 = sshll.u32 %s3278_s15, 4  ;;  %s268_s16 = int_to_ptr.vmem [resolvable:$true] %s267_s16 }
  0x14   : > { %3790 = sst [smem:[#allocation17_spill]] %s3789_s10  ;;  %p2506_p10 = scmp.ge.s32.totalorder %s3276_s29, 2 }
  0x15   : > { %p2976_p9 = pneg %p3376_p8  ;;  %s3794_s2 = sld [smem:[#allocation19_spill]] }
  0x16   : > { %s3781_s21 = smov 64   ;;  %s3782_s22 = smov 4  }
  0x17   : > { %s265_s14 = sshll.u32 %s3792_s4, 4  ;;  %p3388_p11 = pnand %p2976_p9, %p138_p1  ;;  %s266_s14 = int_to_ptr.hbm [resolvable:$true] %s265_s14 }
  0x18   : > { %s3281_s23 = smov [#allocation3]   ;;  %s3795_s5 = sld [smem:[#allocation21_spill]] }
  0x19   : > { %2982 = dma.hbm_to_vmem [thread:$0]  (!%p3388_p11), %s266_s14, 1024, %s268_s16, [#allocation7], %s3781_s21, %s3781_s21, %s3782_s22  }
  0x1a   : > { %s253_s8 = sshll.u32 %s3281_s23, 4  ;;  %s3282_s14 = smov [#allocation9]   ;;  %s254_s8 = int_to_ptr.vmem [resolvable:$true] %s253_s8 }
  0x1b   : > { %s251_s20 = sshll.u32 %s3794_s2, 4  ;;  %s281_s16 = sshll.u32 %s3282_s14, 4  ;;  %s252_s20 = int_to_ptr.hbm [resolvable:$true] %s251_s20  ;;  %s282_s16 = int_to_ptr.vmem [resolvable:$true] %s281_s16 }
  0x1c   : > { %2979 = dma.hbm_to_vmem [thread:$0]  (!%p3388_p11), %s252_s20, 4096, %s254_s8, [#allocation4], %s3781_s21, %s3781_s21, %s3782_s22  }
  0x1d   : > { %s37_s18 = sadd.s32 1, %s3272_s28  ;;  %p131_p13 = scmp.ne.s32.totalorder %s3264_s26, %s3260_s25 }
  0x1e   : > { %s279_s15 = sshll.u32 %s3795_s5, 4  ;;  %p39_p12 = scmp.ge.s32.totalorder %s37_s18, 2  ;;  %s280_s15 = int_to_ptr.hbm [resolvable:$true] %s279_s15 }
  0x1f   : > { %2985 = dma.hbm_to_vmem [thread:$0]  (!%p3388_p11), %s280_s15, 1024, %s282_s16, [#allocation10], %s3781_s21, %s3781_s21, %s3782_s22  }
  0x20   : > { %p132_p0 = scmp.eq.s32.totalorder %s3276_s29, 0  ;;  %s3809_s18 = smov (%p39_p12, %s37_s18), 0 }
  0x21   : > { %3796 = sst [smem:[#allocation18_spill]] %s3809_s18  ;;  %s124_s19 = sadd.s32 1, %s3264_s26 }
  0x22   : > { %p3422_p3 = por %p224_p2, %p131_p13  ;;  %s121_s23 = ssub.s32 %s3272_s28, %s3809_s18 }
  0x23   : > { %p3428_p5 = por %p132_p0, %p131_p13  ;;  %p122_p7 = scmp.eq.s32.totalorder %s121_s23, 0 }
  0x24   : > { %p2997_p9 = scmp.lt.s32.totalorder %s3276_s29, 2  ;;  %s322_s8 = sand.u32 1, %s3276_s29  }
  0x25   : > { %s324_s12 = sand.u32 1, %s3264_s26   ;;  %s2782_s14 = sshll.u32 %s3272_s28, 7 }
  0x26   : > { %s3436_s13 = scalar_select %p122_p7, %s3264_s26, %s124_s19  }
  0x27   : > { %s2507_s15 = sshll.u32 %s324_s12, 7  ;;  %s331_s22 = scalar_lea.hbm %s3776_s3, %s2782_s14 }
  0x28   : > { %s332_s2 = sshll.u32 %s331_s22, 4  ;;  %s326_s4 = scalar_lea.vmem [#allocation6], %s2507_s15  ;;  %s333_s2 = int_to_ptr.hbm [resolvable:$true] %s332_s2 }
  0x29   : > { %s334_s5 = sshll.u32 %s326_s4, 4  ;;  %p2987_p2 = pnand %p2997_p9, %p3428_p5  ;;  %s335_s5 = int_to_ptr.vmem [resolvable:$true] %s334_s5 }
  0x2a   : > { %s323_s18 = scalar_lea.sflag [#allocation7], %s322_s8  ;;  %s3799_s23 = smov 4  }
  0x2b   : > { %s3800_s10 = smov 64   ;;  %346 = sbr.rel (%p3376_p8) target bundleno = 749 (0x2ed), region = 48 }
  0x2c   : > { %2989 = dma.hbm_to_vmem [thread:$0]  (!%p2987_p2), %s333_s2, 2048, %s335_s5, %s323_s18, %s3800_s10, %s3800_s10, %s3799_s23  }
  0x30   : > { %3235 = dma.done.wait (%p138_p1), [#allocation4], 4096  }
  0x31   : > { %3237 = vsyncadd (%p138_p1), [#allocation4], 4294963200  ;;  %s353_s4 = sand.u32 1, %s3357_s30   ;;  %s355_s21 = sand.u32 1, %s3260_s25  }
  0x32   : > { %s3457_s22 = sshll.u32 %s355_s21, 7  ;;  %s354_s2 = scalar_lea.sflag [#allocation7], %s353_s4 }
  0x33   : > { %s3460_s5 = scalar_lea.vmem [#allocation6], %s3457_s22 }
  0x34   : > { %3239 = dma.done.wait (%p3366_p4), %s354_s2, 2048  }
  0x35   : > { %3241 = vsyncadd (%p3366_p4), %s354_s2, 4294965248 }
  0x36   : > { %3243 = dma.done.wait (%p138_p1), [#allocation7], 1024  }
  0x37   : > { %3245 = vsyncadd (%p138_p1), [#allocation7], 4294966272 }
  0x38   : > { %3247 = dma.done.wait (%p138_p1), [#allocation10], 1024  }
  0x39   : > { %3249 = vsyncadd (%p138_p1), [#allocation10], 4294966272  ;;  %v2791_v0 = vld [vmem:[#allocation3 + $0x38] sm:$0xff]  ;;  %s2516_s10 = sshll.u32 %s3268_s27, 3  ;;  %v2790_v2 = vld [vmem:[#allocation3 + $0x30] sm:$0xff]  ;;  %s2519_s19 = sshll.u32 %s3268_s27, 5 }
  0x3a   : > { %v2799_v1 = vld [vmem:[#allocation3 + $0x78] sm:$0xff]  ;;  %2944 = vmatpush.bf16.msra.mxu2 %v2791_v0  ;;  %v2798_v3 = vld [vmem:[#allocation3 + $0x70] sm:$0xff]  ;;  %1111 = vmatpush.bf16.msra.mxu0 %v2791_v0  ;;  %p416_p4 = scmp.lt.s32.totalorder %s2516_s10, 15  ;;  %v2789_v4 = vld [vmem:[#allocation3 + $0x28] sm:$0xff]  ;;  %p427_p1 = scmp.lt.s32.totalorder %s2519_s19, 63  ;;  %v3283_v61 = vmov 0  }
  0x3b   : > { %2952 = vmatpush.bf16.msra.mxu3 %v2799_v1  ;;  %1200 = vmatpush.bf16.msra.mxu1 %v2799_v1  ;;  %v2797_v5 = vld [vmem:[#allocation3 + $0x68] sm:$0xff]  ;;  %v2788_v6 = vld [vmem:[#allocation3 + $0x20] sm:$0xff]  ;;  %v2787_v8 = vld [vmem:[#allocation3 + $0x18] sm:$0xff]  ;;  %s3656_s23 = scalar_lea.vmem [#allocation11], %s3457_s22  ;;  %s2848_s4 = sshll.u32 %s3268_s27, 7 }
  0x3c   : > { %s3811_s10 = smov (!%p416_p4, %s2516_s10), 15  ;;  %v2796_v7 = vld [vmem:[#allocation3 + $0x60] sm:$0xff]  ;;  %v2795_v9 = vld [vmem:[#allocation3 + $0x58] sm:$0xff]  ;;  %v2786_v10 = vld [vmem:[#allocation3 + $0x10] sm:$0xff]  ;;  %s3813_s19 = smov (!%p427_p1, %s2519_s19), 63  ;;  %3058 = vset.pattern.permute.xlu0 %v3283_v61  ;;  %3059 = vset.pattern.permute.xlu1 %v3283_v61 }
  0x3d   : > { %s2783_s30 = sshll.u32 %s3811_s10, 5  ;;  %v2794_v11 = vld [vmem:[#allocation3 + $0x50] sm:$0xff]  ;;  %v2785_v18 = vld [vmem:[#allocation3 + $0x8] sm:$0xff]  ;;  %v2784_v24 = vld [vmem:[#allocation3] sm:$0xff]  ;;  %s2520_s17 = sshll.u32 %s3813_s19, 3  ;;  %3060 = vset.pattern.permute.xlu2 %v3283_v61 }
  0x3e   : > { %2945 = vmatpush.bf16.msra.mxu2 %v2790_v2  ;;  %1112 = vmatpush.bf16.msra.mxu0 %v2790_v2  ;;  %s3478_s18 = scalar_lea.vmem %s3773_s0, %s2783_s30  ;;  %v2793_v19 = vld [vmem:[#allocation3 + $0x48] sm:$0xff]  ;;  %v2792_v25 = vld [vmem:[#allocation3 + $0x40] sm:$0xff]  ;;  %v2807_v26 = vld [vmem:[#allocation3 + $0xb8] sm:$0xff]  ;;  %s3488_s15 = scalar_lea.vmem %s3774_s1, %s2520_s17 }
  0x3f   : > { %2953 = vmatpush.bf16.msra.mxu3 %v2798_v3  ;;  %1201 = vmatpush.bf16.msra.mxu1 %v2798_v3  ;;  %v487_v12 = vld [vmem:[%s3478_s18 + $0x80] sm:$0xff]  ;;  %v488_v13 = vld [vmem:[%s3478_s18 + $0x88] sm:$0xff]  ;;  %v2815_v27 = vld [vmem:[#allocation3 + $0xf8] sm:$0xff]  ;;  %s2353_s10 = sshll.u32 %s3656_s23, 4  ;;  %s2341_s27 = scalar_lea.sflag [#allocation5], %s355_s21  ;;  %s2354_s10 = int_to_ptr.vmem [resolvable:$true] %s2353_s10 }
  0x40   : > { %v567_v14 = vunpack.c.0.s8 %v487_v12  ;;  %v571_v15 = vunpack.c.1.s8 %v487_v12  ;;  %v568_v16 = vunpack.c.0.s8 %v488_v13  ;;  %v572_v17 = vunpack.c.1.s8 %v488_v13  ;;  %v2806_v30 = vld [vmem:[#allocation3 + $0xb0] sm:$0xff]  ;;  %v2805_v32 = vld [vmem:[#allocation3 + $0xa8] sm:$0xff]  ;;  %v2804_v44 = vld [vmem:[#allocation3 + $0xa0] sm:$0xff]  ;;  %s3202_s17 = scalar_lea.hbm %s3780_s7, 256 }
  0x41   : > { %v2814_v31 = vld [vmem:[#allocation3 + $0xf0] sm:$0xff]  ;;  %v2813_v33 = vld [vmem:[#allocation3 + $0xe8] sm:$0xff]  ;;  %v575_v34 = vunpack.c.2.s8 %v487_v12  ;;  %v579_v35 = vunpack.c.3.s8 %v487_v12  ;;  %v576_v36 = vunpack.c.2.s8 %v488_v13  ;;  %v580_v37 = vunpack.c.3.s8 %v488_v13  ;;  %v2812_v45 = vld [vmem:[#allocation3 + $0xe0] sm:$0xff] }
  0x42   : > { %2946 = vmatpush.bf16.msra.mxu2 %v2789_v4  ;;  %1113 = vmatpush.bf16.msra.mxu0 %v2789_v4  ;;  %v695_v20 = vcvt.s32.f32 %v567_v14  ;;  %v699_v21 = vcvt.s32.f32 %v571_v15  ;;  %v696_v22 = vcvt.s32.f32 %v568_v16  ;;  %v700_v23 = vcvt.s32.f32 %v572_v17  ;;  %v491_v46 = vld [vmem:[%s3478_s18 + $0xa0] sm:$0xff]  ;;  %v492_v47 = vld [vmem:[%s3478_s18 + $0xa8] sm:$0xff]  ;;  %v2803_v58 = vld [vmem:[#allocation3 + $0x98] sm:$0xff] }
  0x43   : > { %2954 = vmatpush.bf16.msra.mxu3 %v2797_v5  ;;  %1202 = vmatpush.bf16.msra.mxu1 %v2797_v5  ;;  %v703_v38 = vcvt.s32.f32 %v575_v34  ;;  %v707_v39 = vcvt.s32.f32 %v579_v35  ;;  %v704_v40 = vcvt.s32.f32 %v576_v36  ;;  %v708_v41 = vcvt.s32.f32 %v580_v37  ;;  %v2811_v59 = vld [vmem:[#allocation3 + $0xd8] sm:$0xff]  ;;  %v1566_v60 = vld [vmem:[%s3488_s15] sm:$0xff]  ;;  %v496_v13 = vld [vmem:[%s3478_s18 + $0xc8] sm:$0xff] }
  0x44   : > { %v791_v28 = vpack.c.bf16 %v699_v21, %v695_v20  ;;  %v792_v29 = vpack.c.bf16 %v700_v23, %v696_v22  ;;  %v583_v48 = vunpack.c.0.s8 %v491_v46  ;;  %v587_v49 = vunpack.c.1.s8 %v491_v46  ;;  %1600 = vperm.xlu0 %3058, %v1566_v60   ;;  %v495_v12 = vld [vmem:[%s3478_s18 + $0xc0] sm:$0xff]  ;;  %v1572_v14 = vld [vmem:[%s3488_s15 + $0x30] sm:$0xff] }
  0x45   : > { %v795_v42 = vpack.c.bf16 %v707_v39, %v703_v38  ;;  %v796_v43 = vpack.c.bf16 %v708_v41, %v704_v40  ;;  %v584_v50 = vunpack.c.0.s8 %v492_v47  ;;  %v588_v51 = vunpack.c.1.s8 %v492_v47  ;;  %v1576_v35 = vld [vmem:[%s3488_s15 + $0x50] sm:$0xff]  ;;  %v1581_v40 = vld [vmem:[%s3488_s15 + $0x78] sm:$0xff] }
  0x46   : > { %2947 = vmatpush.bf16.msra.mxu2 %v2788_v6  ;;  %1114 = vmatpush.bf16.msra.mxu0 %v2788_v6  ;;  %v711_v52 = vcvt.s32.f32 %v583_v48  ;;  %v715_v53 = vcvt.s32.f32 %v587_v49  ;;  %v591_v62 = vunpack.c.2.s8 %v491_v46  ;;  %v595_v63 = vunpack.c.3.s8 %v491_v46  ;;  %v1567_v6 = vld [vmem:[%s3488_s15 + $0x8] sm:$0xff]  ;;  %v2808_v46 = vld [vmem:[#allocation3 + $0xc0] sm:$0xff]  ;;  %v1584_v48 = vld [vmem:[%s3488_s15 + $0x90] sm:$0xff] }
  0x47   : > { %2955 = vmatpush.bf16.msra.mxu3 %v2796_v7  ;;  %1203 = vmatpush.bf16.msra.mxu1 %v2796_v7  ;;  %v712_v54 = vcvt.s32.f32 %v584_v50  ;;  %v716_v55 = vcvt.s32.f32 %v588_v51  ;;  %v592_v0 = vunpack.c.2.s8 %v492_v47  ;;  %v596_v1 = vunpack.c.3.s8 %v492_v47  ;;  %v1579_v47 = vld [vmem:[%s3488_s15 + $0x68] sm:$0xff]  ;;  %v471_v49 = vld [vmem:[%s3478_s18] sm:$0xff] }
  0x48   : > { %v799_v56 = vpack.c.bf16 %v715_v53, %v711_v52  ;;  %v719_v2 = vcvt.s32.f32 %v591_v62  ;;  %v723_v3 = vcvt.s32.f32 %v595_v63  ;;  %v599_v15 = vunpack.c.0.s8 %v495_v12  ;;  %v472_v50 = vld [vmem:[%s3478_s18 + $0x8] sm:$0xff] }
  0x49   : > { %v800_v57 = vpack.c.bf16 %v716_v55, %v712_v54  ;;  %v720_v4 = vcvt.s32.f32 %v592_v0  ;;  %v724_v5 = vcvt.s32.f32 %v596_v1  ;;  %v603_v16 = vunpack.c.1.s8 %v495_v12  ;;  %v1582_v1 = vld [vmem:[%s3488_s15 + $0x80] sm:$0xff] }
  0x4a   : > { %2948 = vmatpush.bf16.msra.mxu2 %v2787_v8  ;;  %1115 = vmatpush.bf16.msra.mxu0 %v2787_v8  ;;  %v803_v7 = vpack.c.bf16 %v723_v3, %v719_v2  ;;  %v600_v17 = vunpack.c.0.s8 %v496_v13  ;;  %v727_v20 = vcvt.s32.f32 %v599_v15  ;;  %v612_v34 = vunpack.c.3.s8 %v496_v13  ;;  %v1590_v15 = vld [vmem:[%s3488_s15 + $0xc0] sm:$0xff] }
  0x4b   : > { %2956 = vmatpush.bf16.msra.mxu3 %v2795_v9  ;;  %1204 = vmatpush.bf16.msra.mxu1 %v2795_v9  ;;  %v804_v8 = vpack.c.bf16 %v724_v5, %v720_v4  ;;  %v2802_v9 = vld [vmem:[#allocation3 + $0x90] sm:$0xff]  ;;  %v731_v21 = vcvt.s32.f32 %v603_v16  ;;  %v503_v51 = vunpack.c.0.s8 %v471_v49  ;;  %v507_v52 = vunpack.c.1.s8 %v471_v49 }
  0x4c   : > { %1605 = vperm.xlu0 %3058, %v1567_v6   ;;  %v728_v22 = vcvt.s32.f32 %v600_v17  ;;  %v740_v39 = vcvt.s32.f32 %v612_v34  ;;  %v504_v53 = vunpack.c.0.s8 %v472_v50  ;;  %v508_v54 = vunpack.c.1.s8 %v472_v50  ;;  %v1587_v6 = vld [vmem:[%s3488_s15 + $0xa8] sm:$0xff]  ;;  %v1593_v34 = vld [vmem:[%s3488_s15 + $0xd8] sm:$0xff] }
  0x4d   : > { %v635_v60 = vcvt.s32.f32 %v507_v52  ;;  %v511_v16 = vunpack.c.2.s8 %v471_v49  ;;  %v515_v17 = vunpack.c.3.s8 %v471_v49  ;;  %v476_v49 = vld [vmem:[%s3478_s18 + $0x28] sm:$0xff] }
  0x4e   : > { %2949 = vmatpush.bf16.msra.mxu2 %v2786_v10  ;;  %1116 = vmatpush.bf16.msra.mxu0 %v2786_v10  ;;  %v2810_v10 = vld [vmem:[#allocation3 + $0xd0] sm:$0xff]  ;;  %v632_v61 = vcvt.s32.f32 %v504_v53  ;;  %v636_v62 = vcvt.s32.f32 %v508_v54  ;;  %v520_v52 = vunpack.c.0.s8 %v476_v49  ;;  %v524_v53 = vunpack.c.1.s8 %v476_v49 }
  0x4f   : > { %2957 = vmatpush.bf16.msra.mxu3 %v2794_v11  ;;  %1205 = vmatpush.bf16.msra.mxu1 %v2794_v11  ;;  %v1568_v11 = vld [vmem:[%s3488_s15 + $0x10] sm:$0xff] }
  0x50   : > { %1610 = vperm.xlu1 %3059, %v1568_v11   ;;  %v760_v0 = vpack.c.bf16 %v636_v62, %v632_v61 }
  0x52   : > { %2950 = vmatpush.bf16.msra.mxu2 %v2785_v18  ;;  %1117 = vmatpush.bf16.msra.mxu0 %v2785_v18  ;;  %v604_v18 = vunpack.c.1.s8 %v496_v13 }
  0x53   : > { %2958 = vmatpush.bf16.msra.mxu3 %v2793_v19  ;;  %1206 = vmatpush.bf16.msra.mxu1 %v2793_v19  ;;  %v1569_v19 = vld [vmem:[%s3488_s15 + $0x18] sm:$0xff] }
  0x54   : > { %1630 = vperm.xlu0 %3058, %v1572_v14   ;;  %v732_v23 = vcvt.s32.f32 %v604_v18  ;;  %v1585_v14 = vld [vmem:[%s3488_s15 + $0x98] sm:$0xff]  ;;  %v512_v18 = vunpack.c.2.s8 %v472_v50 }
  0x56   : > { %2951 = vmatpush.bf16.msra.mxu2 %v2784_v24  ;;  %1118 = vmatpush.bf16.msra.mxu0 %v2784_v24  ;;  %v1575_v24 = vld [vmem:[%s3488_s15 + $0x48] sm:$0xff] }
  0x57   : > { %2959 = vmatpush.bf16.msra.mxu3 %v2792_v25  ;;  %1207 = vmatpush.bf16.msra.mxu1 %v2792_v25  ;;  %v807_v25 = vpack.c.bf16 %v731_v21, %v727_v20 }
  0x58   : > { %1615 = vperm.xlu1 %3059, %v1569_v19   ;;  %v516_v19 = vunpack.c.3.s8 %v472_v50 }
  0x59   : > { %1159 = vmatmul.bf16.vlgmr.msra.gmra.mxu2 %v791_v28  ;;  %v2809_v28 = vld [vmem:[#allocation3 + $0xc8] sm:$0xff] }
  0x5a   : > { %1289 = vmatpush.bf16.msrb.mxu2 %v2807_v26  ;;  %1248 = vmatmul.bf16.vlgmr.msra.gmra.mxu3 %v792_v29  ;;  %v808_v26 = vpack.c.bf16 %v732_v23, %v728_v22  ;;  %v1573_v29 = vld [vmem:[%s3488_s15 + $0x38] sm:$0xff] }
  0x5b   : > { %1378 = vmatpush.bf16.msrb.mxu3 %v2815_v27  ;;  %v2801_v27 = vld [vmem:[#allocation3 + $0x88] sm:$0xff]  ;;  %1208 = vmatmul.bf16.vlgmr.msra.gmra.mxu1 %v760_v0  ;;  %v1577_v0 = vld [vmem:[%s3488_s15 + $0x58] sm:$0xff] }
  0x5c   : > { %1645 = vperm.xlu0 %3058, %v1575_v24   ;;  %v639_v24 = vcvt.s32.f32 %v511_v16  ;;  %v532_v16 = vunpack.c.3.s8 %v476_v49 }
  0x5e   : > { %1290 = vmatpush.bf16.msrb.mxu2 %v2806_v30  ;;  %v1578_v30 = vld [vmem:[%s3488_s15 + $0x60] sm:$0xff] }
  0x5f   : > { %1379 = vmatpush.bf16.msrb.mxu3 %v2814_v31  ;;  %v607_v31 = vunpack.c.2.s8 %v495_v12 }
  0x60   : > { %1635 = vperm.xlu1 %3059, %v1573_v29  }
  0x61   : > { %v735_v36 = vcvt.s32.f32 %v607_v31 }
  0x62   : > { %1291 = vmatpush.bf16.msrb.mxu2 %v2805_v32  ;;  %v611_v32 = vunpack.c.3.s8 %v495_v12 }
  0x63   : > { %1380 = vmatpush.bf16.msrb.mxu3 %v2813_v33  ;;  %v608_v33 = vunpack.c.2.s8 %v496_v13  ;;  %v1570_v13 = vld [vmem:[%s3488_s15 + $0x20] sm:$0xff] }
  0x64   : > { %1660 = vperm.xlu0 %3058, %v1578_v30   ;;  %v739_v37 = vcvt.s32.f32 %v611_v32  ;;  %1620 = vperm.xlu2 %3060, %v1570_v13   ;;  %v1571_v32 = vld [vmem:[%s3488_s15 + $0x28] sm:$0xff] }
  0x65   : > { %v736_v38 = vcvt.s32.f32 %v608_v33  ;;  %v1588_v33 = vld [vmem:[%s3488_s15 + $0xb0] sm:$0xff] }
  0x66   : > { %1292 = vmatpush.bf16.msrb.mxu2 %v2804_v44  ;;  %v811_v41 = vpack.c.bf16 %v739_v37, %v735_v36  ;;  %v500_v44 = vld [vmem:[%s3478_s18 + $0xe8] sm:$0xff]  ;;  %v474_v36 = vld [vmem:[%s3478_s18 + $0x18] sm:$0xff] }
  0x67   : > { %1381 = vmatpush.bf16.msrb.mxu3 %v2812_v45  ;;  %v2800_v45 = vld [vmem:[#allocation3 + $0x80] sm:$0xff]  ;;  %v624_v11 = vunpack.c.2.s8 %v500_v44  ;;  %v628_v12 = vunpack.c.3.s8 %v500_v44 }
  0x68   : > { %1650 = vperm.xlu1 %3059, %v1576_v35   ;;  %v473_v35 = vld [vmem:[%s3478_s18 + $0x10] sm:$0xff] }
  0x69   : > { %1164 = vmatmul.bf16.gmra.mxu2 %v795_v42  ;;  %v812_v42 = vpack.c.bf16 %v740_v39, %v736_v38  ;;  %v752_v22 = vcvt.s32.f32 %v624_v11  ;;  %v756_v23 = vcvt.s32.f32 %v628_v12  ;;  %v505_v37 = vunpack.c.0.s8 %v473_v35  ;;  %v1580_v11 = vld [vmem:[%s3488_s15 + $0x70] sm:$0xff]  ;;  %v1597_v12 = vld [vmem:[%s3488_s15 + $0xf8] sm:$0xff] }
  0x6a   : > { %1253 = vmatmul.bf16.gmra.mxu3 %v796_v43  ;;  %1293 = vmatpush.bf16.msrb.mxu2 %v2803_v58  ;;  %v499_v43 = vld [vmem:[%s3478_s18 + $0xe0] sm:$0xff]  ;;  %v620_v58 = vunpack.c.1.s8 %v500_v44  ;;  %v509_v38 = vunpack.c.1.s8 %v473_v35  ;;  %v506_v39 = vunpack.c.0.s8 %v474_v36 }
  0x6b   : > { %1382 = vmatpush.bf16.msrb.mxu3 %v2811_v59  ;;  %v615_v55 = vunpack.c.0.s8 %v499_v43  ;;  %v631_v59 = vcvt.s32.f32 %v503_v51  ;;  %v820_v31 = vpack.c.bf16 %v756_v23, %v752_v22  ;;  %v633_v50 = vcvt.s32.f32 %v505_v37 }
  0x6c   : > { %1675 = vperm.xlu0 %3058, %v1581_v40   ;;  %v748_v5 = vcvt.s32.f32 %v620_v58  ;;  %1625 = vperm.xlu2 %3060, %v1571_v32   ;;  %v510_v40 = vunpack.c.1.s8 %v474_v36  ;;  %v637_v51 = vcvt.s32.f32 %v509_v38  ;;  %v634_v54 = vcvt.s32.f32 %v506_v39  ;;  %v1583_v32 = vld [vmem:[%s3488_s15 + $0x88] sm:$0xff] }
  0x6d   : > { %v759_v63 = vpack.c.bf16 %v635_v60, %v631_v59  ;;  %v743_v2 = vcvt.s32.f32 %v615_v55  ;;  %v648_v58 = vcvt.s32.f32 %v520_v52  ;;  %v652_v59 = vcvt.s32.f32 %v524_v53 }
  0x6e   : > { %1294 = vmatpush.bf16.msrb.mxu2 %v2802_v9  ;;  %v623_v9 = vunpack.c.2.s8 %v499_v43  ;;  %v638_v55 = vcvt.s32.f32 %v510_v40  ;;  %v761_v62 = vpack.c.bf16 %v637_v51, %v633_v50 }
  0x6f   : > { %1383 = vmatpush.bf16.msrb.mxu3 %v2810_v10  ;;  %1119 = vmatmul.bf16.vlgmr.msra.gmra.mxu0 %v759_v63  ;;  %v627_v10 = vunpack.c.3.s8 %v499_v43  ;;  %v768_v61 = vpack.c.bf16 %v652_v59, %v648_v58 }
  0x70   : > { %1665 = vperm.xlu1 %3059, %v1579_v47   ;;  %v751_v20 = vcvt.s32.f32 %v623_v9  ;;  %v762_v63 = vpack.c.bf16 %v638_v55, %v634_v54  ;;  %v2846_v9 = vld [vmem:[#allocation9 + $0x30] sm:$0xff] }
  0x71   : > { %v755_v21 = vcvt.s32.f32 %v627_v10  ;;  %v2838_v10 = vld [vmem:[#allocation8 + $0x30] sm:$0xff] }
  0x72   : > { %1295 = vmatpush.bf16.msrb.mxu2 %v2801_v27  ;;  %v644_v27 = vcvt.s32.f32 %v516_v19 }
  0x73   : > { %1384 = vmatpush.bf16.msrb.mxu3 %v2809_v28  ;;  %v819_v30 = vpack.c.bf16 %v755_v21, %v751_v20 }
  0x74   : > { %1690 = vperm.xlu0 %3058, %v1584_v48  }
  0x76   : > { %1296 = vmatpush.bf16.msrb.mxu2 %v2800_v45  ;;  %v1596_v45 = vld [vmem:[%s3488_s15 + $0xf0] sm:$0xff] }
  0x77   : > { %1385 = vmatpush.bf16.msrb.mxu3 %v2808_v46  ;;  %v475_v46 = vld [vmem:[%s3478_s18 + $0x20] sm:$0xff] }
  0x78   : > { %1680 = vperm.xlu1 %3059, %v1582_v1   ;;  %v519_v47 = vunpack.c.0.s8 %v475_v46  ;;  %v523_v48 = vunpack.c.1.s8 %v475_v46  ;;  %v1594_v1 = vld [vmem:[%s3488_s15 + $0xe0] sm:$0xff]  ;;  %v527_v13 = vunpack.c.2.s8 %v475_v46 }
  0x79   : > { %1169 = vmatmul.bf16.gmra.mxu2 %v799_v56  ;;  %v619_v56 = vunpack.c.1.s8 %v499_v43  ;;  %v1574_v43 = vld [vmem:[%s3488_s15 + $0x40] sm:$0xff] }
  0x7a   : > { %1258 = vmatmul.bf16.gmra.mxu3 %v800_v57  ;;  %v616_v57 = vunpack.c.0.s8 %v500_v44  ;;  %1640 = vperm.xlu2 %3060, %v1574_v43   ;;  %v1591_v44 = vld [vmem:[%s3488_s15 + $0xc8] sm:$0xff]  ;;  %v655_v21 = vcvt.s32.f32 %v527_v13  ;;  %v1592_v13 = vld [vmem:[%s3488_s15 + $0xd0] sm:$0xff] }
  0x7b   : > { %v747_v3 = vcvt.s32.f32 %v619_v56  ;;  %v647_v56 = vcvt.s32.f32 %v519_v47  ;;  %v2837_v43 = vld [vmem:[#allocation8 + $0x28] sm:$0xff] }
  0x7c   : > { %v744_v4 = vcvt.s32.f32 %v616_v57  ;;  %1705 = vperm.xlu0 %3058, %v1587_v6   ;;  %v651_v57 = vcvt.s32.f32 %v523_v48  ;;  %v514_v6 = vunpack.c.2.s8 %v474_v36 }
  0x7e   : > { %v767_v60 = vpack.c.bf16 %v651_v57, %v647_v56  ;;  %v642_v19 = vcvt.s32.f32 %v514_v6 }
  0x80   : > { %1695 = vperm.xlu1 %3059, %v1585_v14   ;;  %v531_v14 = vunpack.c.3.s8 %v475_v46  ;;  %v480_v46 = vld [vmem:[%s3478_s18 + $0x48] sm:$0xff] }
  0x81   : > { %v540_v50 = vunpack.c.1.s8 %v480_v46 }
  0x82   : > { %1655 = vperm.xlu2 %3060, %v1577_v0   ;;  %v659_v22 = vcvt.s32.f32 %v531_v14 }
  0x83   : > { %v668_v58 = vcvt.s32.f32 %v540_v50 }
  0x84   : > { %1720 = vperm.xlu0 %3058, %v1590_v15   ;;  %v528_v15 = vunpack.c.2.s8 %v476_v49  ;;  %v536_v49 = vunpack.c.0.s8 %v480_v46 }
  0x86   : > { %v656_v23 = vcvt.s32.f32 %v528_v15  ;;  %v664_v57 = vcvt.s32.f32 %v536_v49 }
  0x88   : > { %1710 = vperm.xlu1 %3059, %v1588_v33   ;;  %v477_v33 = vld [vmem:[%s3478_s18 + $0x30] sm:$0xff] }
  0x89   : > { %1174 = vmatmul.bf16.gmra.mxu2 %v803_v7  ;;  %v815_v7 = vpack.c.bf16 %v747_v3, %v743_v2  ;;  %v521_v37 = vunpack.c.0.s8 %v477_v33  ;;  %v525_v38 = vunpack.c.1.s8 %v477_v33  ;;  %v533_v6 = vunpack.c.3.s8 %v477_v33 }
  0x8a   : > { %1263 = vmatmul.bf16.gmra.mxu3 %v804_v8  ;;  %v816_v8 = vpack.c.bf16 %v748_v5, %v744_v4  ;;  %v513_v4 = vunpack.c.2.s8 %v473_v35  ;;  %v517_v5 = vunpack.c.3.s8 %v473_v35  ;;  %1670 = vperm.xlu2 %3060, %v1580_v11   ;;  %v2844_v11 = vld [vmem:[#allocation9 + $0x20] sm:$0xff] }
  0x8b   : > { %v649_v51 = vcvt.s32.f32 %v521_v37  ;;  %v653_v52 = vcvt.s32.f32 %v525_v38 }
  0x8c   : > { %1735 = vperm.xlu0 %3058, %v1593_v34   ;;  %v478_v34 = vld [vmem:[%s3478_s18 + $0x38] sm:$0xff] }
  0x8d   : > { %v522_v39 = vunpack.c.0.s8 %v478_v34  ;;  %v526_v40 = vunpack.c.1.s8 %v478_v34  ;;  %v769_v0 = vpack.c.bf16 %v653_v52, %v649_v51 }
  0x8f   : > { %v650_v53 = vcvt.s32.f32 %v522_v39  ;;  %v654_v54 = vcvt.s32.f32 %v526_v40 }
  0x90   : > { %1725 = vperm.xlu1 %3059, %v1591_v44   ;;  %v1586_v44 = vld [vmem:[%s3488_s15 + $0xa0] sm:$0xff] }
  0x92   : > { %1685 = vperm.xlu2 %3060, %v1583_v32  }
  0x94   : > { %1750 = vperm.xlu0 %3058, %v1596_v45   ;;  %v479_v45 = vld [vmem:[%s3478_s18 + $0x40] sm:$0xff] }
  0x95   : > { %v535_v47 = vunpack.c.0.s8 %v479_v45  ;;  %v539_v48 = vunpack.c.1.s8 %v479_v45  ;;  %v543_v14 = vunpack.c.2.s8 %v479_v45  ;;  %v547_v15 = vunpack.c.3.s8 %v479_v45  ;;  %v2843_v45 = vld [vmem:[#allocation9 + $0x18] sm:$0xff] }
  0x97   : > { %v663_v55 = vcvt.s32.f32 %v535_v47  ;;  %v667_v56 = vcvt.s32.f32 %v539_v48  ;;  %v483_v47 = vld [vmem:[%s3478_s18 + $0x60] sm:$0xff]  ;;  %v484_v48 = vld [vmem:[%s3478_s18 + $0x68] sm:$0xff] }
  0x98   : > { %1740 = vperm.xlu1 %3059, %v1594_v1   ;;  %v770_v1 = vpack.c.bf16 %v654_v54, %v650_v53  ;;  %v551_v49 = vunpack.c.0.s8 %v483_v47  ;;  %v555_v50 = vunpack.c.1.s8 %v483_v47  ;;  %v552_v51 = vunpack.c.0.s8 %v484_v48 }
  0x99   : > { %1179 = vmatmul.bf16.gmra.mxu2 %v807_v25  ;;  %v643_v25 = vcvt.s32.f32 %v515_v17  ;;  %v641_v17 = vcvt.s32.f32 %v513_v4  ;;  %v775_v59 = vpack.c.bf16 %v667_v56, %v663_v55  ;;  %v556_v52 = vunpack.c.1.s8 %v484_v48 }
  0x9a   : > { %1268 = vmatmul.bf16.gmra.mxu3 %v808_v26  ;;  %v640_v26 = vcvt.s32.f32 %v512_v18  ;;  %v645_v18 = vcvt.s32.f32 %v517_v5  ;;  %1700 = vperm.xlu2 %3060, %v1586_v44   ;;  %v529_v5 = vunpack.c.2.s8 %v477_v33 }
  0x9b   : > { %v763_v28 = vpack.c.bf16 %v643_v25, %v639_v24  ;;  %v660_v24 = vcvt.s32.f32 %v532_v16  ;;  %v771_v25 = vpack.c.bf16 %v659_v22, %v655_v21  ;;  %v544_v16 = vunpack.c.2.s8 %v480_v46 }
  0x9c   : > { %v764_v29 = vpack.c.bf16 %v644_v27, %v640_v26  ;;  %v671_v22 = vcvt.s32.f32 %v543_v14  ;;  %v2842_v14 = vld [vmem:[#allocation9 + $0x10] sm:$0xff] }
  0x9d   : > { %1124 = vmatmul.bf16.gmra.mxu0 %v763_v28  ;;  %v772_v26 = vpack.c.bf16 %v660_v24, %v656_v23  ;;  %v675_v23 = vcvt.s32.f32 %v547_v15  ;;  %v672_v24 = vcvt.s32.f32 %v544_v16  ;;  %v2834_v15 = vld [vmem:[#allocation8 + $0x10] sm:$0xff]  ;;  %v559_v16 = vunpack.c.2.s8 %v483_v47 }
  0x9e   : > { %1213 = vmatmul.bf16.gmra.mxu1 %v764_v29 }
  0xa0   : > { %1755 = vperm.xlu1 %3059, %v1597_v12   ;;  %v2836_v12 = vld [vmem:[#allocation8 + $0x20] sm:$0xff] }
  0xa9   : > { %1184 = vmatmul.bf16.gmra.mxu2 %v811_v41  ;;  %v2847_v41 = vld [vmem:[#allocation9 + $0x38] sm:$0xff] }
  0xaa   : > { %1273 = vmatmul.bf16.gmra.mxu3 %v812_v42  ;;  %v2839_v42 = vld [vmem:[#allocation8 + $0x38] sm:$0xff]  ;;  %1918 = vmatpush.bf16.msrb.mxu0 %v2847_v41 }
  0xab   : > { %2151 = vmatpush.bf16.msrb.mxu1 %v2839_v42  ;;  %v2845_v42 = vld [vmem:[#allocation9 + $0x28] sm:$0xff] }
  0xad   : > { %1129 = vmatmul.bf16.gmra.mxu0 %v767_v60  ;;  %v776_v60 = vpack.c.bf16 %v668_v58, %v664_v57  ;;  %v679_v57 = vcvt.s32.f32 %v551_v49  ;;  %v683_v58 = vcvt.s32.f32 %v555_v50  ;;  %v2833_v49 = vld [vmem:[#allocation8 + $0x8] sm:$0xff] }
  0xae   : > { %1218 = vmatmul.bf16.gmra.mxu1 %v768_v61  ;;  %1919 = vmatpush.bf16.msrb.mxu0 %v2846_v9  ;;  %v534_v9 = vunpack.c.3.s8 %v478_v34 }
  0xaf   : > { %2152 = vmatpush.bf16.msrb.mxu1 %v2838_v10 }
  0xb0   : > { %v662_v21 = vcvt.s32.f32 %v534_v9 }
  0xb2   : > { %1920 = vmatpush.bf16.msrb.mxu0 %v2845_v42 }
  0xb3   : > { %2153 = vmatpush.bf16.msrb.mxu1 %v2837_v43 }
  0xb6   : > { %1921 = vmatpush.bf16.msrb.mxu0 %v2844_v11 }
  0xb7   : > { %2154 = vmatpush.bf16.msrb.mxu1 %v2836_v12 }
  0xb9   : > { %1189 = vmatmul.bf16.gmra.mxu2 %v815_v7  ;;  %v518_v7 = vunpack.c.3.s8 %v474_v36 }
  0xba   : > { %1278 = vmatmul.bf16.gmra.mxu3 %v816_v8  ;;  %1922 = vmatpush.bf16.msrb.mxu0 %v2843_v45 }
  0xbb   : > { %v646_v20 = vcvt.s32.f32 %v518_v7  ;;  %v530_v7 = vunpack.c.2.s8 %v478_v34  ;;  %v1595_v34 = vld [vmem:[%s3488_s15 + $0xe8] sm:$0xff] }
  0xbd   : > { %1134 = vmatmul.bf16.gmra.mxu0 %v771_v25 }
  0xbe   : > { %1223 = vmatmul.bf16.gmra.mxu1 %v772_v26  ;;  %v779_v26 = vpack.c.bf16 %v675_v23, %v671_v22  ;;  %1923 = vmatpush.bf16.msrb.mxu0 %v2842_v14 }
  0xc9   : > { %1194 = vmatmul.bf16.gmra.mxu2 %v819_v30  ;;  %v765_v30 = vpack.c.bf16 %v645_v18, %v641_v17  ;;  %v548_v17 = vunpack.c.3.s8 %v480_v46  ;;  %v657_v18 = vcvt.s32.f32 %v529_v5  ;;  %v2835_v46 = vld [vmem:[#allocation8 + $0x18] sm:$0xff] }
  0xca   : > { %1283 = vmatmul.bf16.gmra.mxu3 %v820_v31  ;;  %v766_v31 = vpack.c.bf16 %v646_v20, %v642_v19  ;;  %v661_v19 = vcvt.s32.f32 %v533_v6  ;;  %v658_v20 = vcvt.s32.f32 %v530_v7  ;;  %2155 = vmatpush.bf16.msrb.mxu1 %v2835_v46 }
  0xcb   : > { %v676_v25 = vcvt.s32.f32 %v548_v17  ;;  %v563_v17 = vunpack.c.3.s8 %v483_v47 }
  0xcc   : > { %v773_v32 = vpack.c.bf16 %v661_v19, %v657_v18  ;;  %v774_v33 = vpack.c.bf16 %v662_v21, %v658_v20  ;;  %v560_v18 = vunpack.c.2.s8 %v484_v48  ;;  %v564_v19 = vunpack.c.3.s8 %v484_v48  ;;  %v2841_v48 = vld [vmem:[#allocation9 + $0x8] sm:$0xff] }
  0xcd   : > { %1139 = vmatmul.bf16.gmra.mxu0 %v775_v59  ;;  %v680_v59 = vcvt.s32.f32 %v552_v51 }
  0xce   : > { %1228 = vmatmul.bf16.gmra.mxu1 %v776_v60  ;;  %v684_v60 = vcvt.s32.f32 %v556_v52  ;;  %1924 = vmatpush.bf16.msrb.mxu0 %v2841_v48 }
  0xcf   : > { %2156 = vmatpush.bf16.msrb.mxu1 %v2834_v15  ;;  %v2840_v15 = vld [vmem:[#allocation9] sm:$0xff] }
  0xd2   : > { %1925 = vmatpush.bf16.msrb.mxu0 %v2840_v15 }
  0xd3   : > { %2157 = vmatpush.bf16.msrb.mxu1 %v2833_v49 }
  0xd8   : > { %v3564_v50 = vpop.f32.mrf.mxu1 }
  0xd9   : > { %1297 = vmatmul.bf16.vlgmr.msrb.gmra.mxu2 %v761_v62 }
  0xda   : > { %1386 = vmatmul.bf16.vlgmr.msrb.gmra.mxu3 %v762_v63 }
  0xdc   : > { %v1160_v2 = vpop.f32.mrf.mxu2 }
  0xdd   : > { %v1249_v3 = vpop.f32.mrf.mxu3  ;;  %1144 = vmatmul.bf16.gmra.mxu0 %v779_v26  ;;  %v688_v26 = vcvt.s32.f32 %v560_v18  ;;  %v2816_v18 = vld [vmem:[%s3460_s5] sm:$0xff] }
  0xde   : > { %v3525_v8 = vadd.f32 %v1249_v3, %v1160_v2  ;;  %v1589_v2 = vld [vmem:[%s3488_s15 + $0xb8] sm:$0xff] }
  0xdf   : > { %1715 = vperm.xlu2 %3060, %v1589_v2  }
  0xe4   : > { %v1162_v27 = vpop.f32.mrf.mxu2 }
  0xe5   : > { %v1251_v28 = vpop.f32.mrf.mxu3 }
  0xe6   : > { %v3529_v29 = vadd.f32 %v1251_v28, %v1162_v27  ;;  %v780_v27 = vpack.c.bf16 %v676_v25, %v672_v24  ;;  %v687_v24 = vcvt.s32.f32 %v559_v16  ;;  %v691_v25 = vcvt.s32.f32 %v563_v17 }
  0xe7   : > { %1730 = vperm.xlu2 %3060, %v1592_v13  }
  0xe8   : > { %1233 = vmatmul.bf16.gmra.mxu1 %v780_v27  ;;  %v692_v27 = vcvt.s32.f32 %v564_v19 }
  0xe9   : > { %1302 = vmatmul.bf16.gmra.mxu2 %v765_v30 }
  0xea   : > { %1391 = vmatmul.bf16.gmra.mxu3 %v766_v31 }
  0xec   : > { %v1165_v35 = vpop.f32.mrf.mxu2 }
  0xed   : > { %v1254_v36 = vpop.f32.mrf.mxu3 }
  0xee   : > { %v3534_v41 = vadd.f32 %v1254_v36, %v1165_v35  ;;  %v481_v35 = vld [vmem:[%s3478_s18 + $0x50] sm:$0xff]  ;;  %v482_v36 = vld [vmem:[%s3478_s18 + $0x58] sm:$0xff] }
  0xef   : > { %1745 = vperm.xlu2 %3060, %v1595_v34   ;;  %v537_v39 = vunpack.c.0.s8 %v481_v35  ;;  %v541_v40 = vunpack.c.1.s8 %v481_v35  ;;  %v538_v42 = vunpack.c.0.s8 %v482_v36  ;;  %v542_v43 = vunpack.c.1.s8 %v482_v36 }
  0xf0   : > { %v545_v7 = vunpack.c.2.s8 %v481_v35  ;;  %v549_v9 = vunpack.c.3.s8 %v481_v35  ;;  %v546_v11 = vunpack.c.2.s8 %v482_v36  ;;  %v550_v12 = vunpack.c.3.s8 %v482_v36 }
  0xf1   : > { %v665_v53 = vcvt.s32.f32 %v537_v39  ;;  %v669_v54 = vcvt.s32.f32 %v541_v40  ;;  %v666_v55 = vcvt.s32.f32 %v538_v42  ;;  %v670_v56 = vcvt.s32.f32 %v542_v43 }
  0xf2   : > { %v673_v20 = vcvt.s32.f32 %v545_v7  ;;  %v677_v21 = vcvt.s32.f32 %v549_v9  ;;  %v674_v22 = vcvt.s32.f32 %v546_v11  ;;  %v678_v23 = vcvt.s32.f32 %v550_v12  ;;  %v2832_v7 = vld [vmem:[#allocation8] sm:$0xff] }
  0xf3   : > { %2158 = vmatpush.bf16.msrb.mxu1 %v2832_v7 }
  0xf4   : > { %v1167_v61 = vpop.f32.mrf.mxu2  ;;  %v781_v35 = vpack.c.bf16 %v677_v21, %v673_v20  ;;  %v782_v36 = vpack.c.bf16 %v678_v23, %v674_v22 }
  0xf5   : > { %v1256_v62 = vpop.f32.mrf.mxu3 }
  0xf6   : > { %v3539_v63 = vadd.f32 %v1256_v62, %v1167_v61  ;;  %v783_v61 = vpack.c.bf16 %v683_v58, %v679_v57  ;;  %v784_v62 = vpack.c.bf16 %v684_v60, %v680_v59  ;;  %v1120_v60 = vpop.f32.mrf.mxu0 }
  0xf8   : > { %1149 = vmatmul.bf16.gmra.mxu0 %v783_v61  ;;  %1238 = vmatmul.bf16.gmra.mxu1 %v784_v62  ;;  %v3568_v61 = vpop.f32.mrf.mxu1 }
  0xf9   : > { %1307 = vmatmul.bf16.gmra.mxu2 %v769_v0 }
  0xfa   : > { %1396 = vmatmul.bf16.gmra.mxu3 %v770_v1 }
  0xfc   : > { %v1170_v3 = vpop.f32.mrf.mxu2 }
  0xfd   : > { %v1259_v4 = vpop.f32.mrf.mxu3 }
  0xfe   : > { %v3542_v10 = vadd.f32 %v1259_v4, %v1170_v3  ;;  %v777_v3 = vpack.c.bf16 %v669_v54, %v665_v53  ;;  %v778_v4 = vpack.c.bf16 %v670_v56, %v666_v55  ;;  %v1122_v16 = vpop.f32.mrf.mxu0 }
 0x104   : > { %v1172_v28 = vpop.f32.mrf.mxu2 }
 0x105   : > { %v1261_v30 = vpop.f32.mrf.mxu3 }
 0x106   : > { %v3545_v31 = vadd.f32 %v1261_v30, %v1172_v28  ;;  %v787_v28 = vpack.c.bf16 %v691_v25, %v687_v24  ;;  %v788_v30 = vpack.c.bf16 %v692_v27, %v688_v26  ;;  %v489_v24 = vld [vmem:[%s3478_s18 + $0x90] sm:$0xff]  ;;  %v490_v25 = vld [vmem:[%s3478_s18 + $0x98] sm:$0xff] }
 0x108   : > { %1154 = vmatmul.bf16.gmra.mxu0 %v787_v28  ;;  %1243 = vmatmul.bf16.gmra.mxu1 %v788_v30  ;;  %v569_v30 = vunpack.c.0.s8 %v489_v24 }
 0x109   : > { %1312 = vmatmul.bf16.gmra.mxu2 %v773_v32 }
 0x10a   : > { %1401 = vmatmul.bf16.gmra.mxu3 %v774_v33 }
 0x10c   : > { %v1175_v37 = vpop.f32.mrf.mxu2 }
 0x10d   : > { %v1264_v38 = vpop.f32.mrf.mxu3 }
 0x10e   : > { %v3550_v44 = vadd.f32 %v1264_v38, %v1175_v37  ;;  %v485_v37 = vld [vmem:[%s3478_s18 + $0x70] sm:$0xff]  ;;  %v486_v38 = vld [vmem:[%s3478_s18 + $0x78] sm:$0xff] }
 0x10f   : > { %v553_v42 = vunpack.c.0.s8 %v485_v37  ;;  %v557_v45 = vunpack.c.1.s8 %v485_v37  ;;  %v554_v46 = vunpack.c.0.s8 %v486_v38  ;;  %v558_v47 = vunpack.c.1.s8 %v486_v38 }
 0x111   : > { %v681_v51 = vcvt.s32.f32 %v553_v42  ;;  %v685_v52 = vcvt.s32.f32 %v557_v45  ;;  %v682_v53 = vcvt.s32.f32 %v554_v46  ;;  %v686_v54 = vcvt.s32.f32 %v558_v47  ;;  %v2817_v46 = vld [vmem:[%s3460_s5 + $0x8] sm:$0xff] }
 0x113   : > { %v785_v58 = vpack.c.bf16 %v685_v52, %v681_v51  ;;  %v786_v59 = vpack.c.bf16 %v686_v54, %v682_v53 }
 0x114   : > { %v1177_v0 = vpop.f32.mrf.mxu2 }
 0x115   : > { %v1266_v1 = vpop.f32.mrf.mxu3 }
 0x116   : > { %v3554_v2 = vadd.f32 %v1266_v1, %v1177_v0  ;;  %v561_v1 = vunpack.c.2.s8 %v485_v37 }
 0x118   : > { %v689_v9 = vcvt.s32.f32 %v561_v1  ;;  %2159 = vmatmul.bf16.vlgmr.msrb.gmra.mxu1 %v2816_v18  ;;  %v582_v1 = vunpack.c.3.s8 %v490_v25  ;;  %v2818_v18 = vld [vmem:[%s3460_s5 + $0x10] sm:$0xff] }
 0x119   : > { %1317 = vmatmul.bf16.gmra.mxu2 %v777_v3 }
 0x11a   : > { %1406 = vmatmul.bf16.gmra.mxu3 %v778_v4  ;;  %v565_v4 = vunpack.c.3.s8 %v485_v37  ;;  %v1125_v37 = vpop.f32.mrf.mxu0 }
 0x11b   : > { %v3572_v17 = vpop.f32.mrf.mxu1 }
 0x11c   : > { %v1180_v5 = vpop.f32.mrf.mxu2  ;;  %v693_v11 = vcvt.s32.f32 %v565_v4  ;;  %v1601_v4 = vpop.permute.xlu0 %1600 }
 0x11d   : > { %v1269_v6 = vpop.f32.mrf.mxu3 }
 0x11e   : > { %v3556_v13 = vadd.f32 %v1269_v6, %v1180_v5  ;;  %v562_v5 = vunpack.c.2.s8 %v486_v38  ;;  %v566_v6 = vunpack.c.3.s8 %v486_v38  ;;  %v789_v22 = vpack.c.bf16 %v693_v11, %v689_v9 }
 0x11f   : > { %v697_v38 = vcvt.s32.f32 %v569_v30  ;;  %v710_v11 = vcvt.s32.f32 %v582_v1  ;;  %v493_v30 = vld [vmem:[%s3478_s18 + $0xb0] sm:$0xff] }
 0x120   : > { %v690_v12 = vcvt.s32.f32 %v562_v5  ;;  %v694_v14 = vcvt.s32.f32 %v566_v6 }
 0x122   : > { %v790_v23 = vpack.c.bf16 %v694_v14, %v690_v12  ;;  %v1127_v53 = vpop.f32.mrf.mxu0  ;;  %v1212_v14 = vadd.f32 %v3568_v61, %v1122_v16  ;;  %v494_v61 = vld [vmem:[%s3478_s18 + $0xb8] sm:$0xff] }
 0x123   : > { %v3579_v26 = vpop.f32.mrf.mxu1 }
 0x124   : > { %v1182_v32 = vpop.f32.mrf.mxu2 }
 0x125   : > { %v1271_v33 = vpop.f32.mrf.mxu3 }
 0x126   : > { %v3558_v34 = vadd.f32 %v1271_v33, %v1182_v32  ;;  %v573_v33 = vunpack.c.1.s8 %v489_v24 }
 0x128   : > { %2164 = vmatmul.bf16.gmra.mxu1 %v2817_v46  ;;  %v586_v46 = vunpack.c.0.s8 %v494_v61 }
 0x129   : > { %1322 = vmatmul.bf16.gmra.mxu2 %v781_v35  ;;  %v570_v35 = vunpack.c.0.s8 %v490_v25 }
 0x12a   : > { %1411 = vmatmul.bf16.gmra.mxu3 %v782_v36  ;;  %v574_v36 = vunpack.c.1.s8 %v490_v25  ;;  %v1130_v12 = vpop.f32.mrf.mxu0 }
 0x12b   : > { %v3583_v45 = vpop.f32.mrf.mxu1 }
 0x12c   : > { %v1185_v39 = vpop.f32.mrf.mxu2  ;;  %v702_v42 = vcvt.s32.f32 %v574_v36 }
 0x12d   : > { %v1274_v40 = vpop.f32.mrf.mxu3 }
 0x12e   : > { %v3562_v43 = vadd.f32 %v1274_v40, %v1185_v39  ;;  %v701_v39 = vcvt.s32.f32 %v573_v33  ;;  %v698_v40 = vcvt.s32.f32 %v570_v35 }
 0x130   : > { %v793_v51 = vpack.c.bf16 %v701_v39, %v697_v38  ;;  %v794_v52 = vpack.c.bf16 %v702_v42, %v698_v40  ;;  %v585_v39 = vunpack.c.0.s8 %v493_v30  ;;  %v1215_v40 = vadd.f32 %v3572_v17, %v1125_v37 }
 0x131   : > { %v589_v42 = vunpack.c.1.s8 %v493_v30 }
 0x132   : > { %v1132_v33 = vpop.f32.mrf.mxu0 }
 0x133   : > { %v3588_v54 = vpop.f32.mrf.mxu1 }
 0x134   : > { %v1187_v55 = vpop.f32.mrf.mxu2 }
 0x135   : > { %v1276_v56 = vpop.f32.mrf.mxu3 }
 0x136   : > { %v3566_v57 = vadd.f32 %v1276_v56, %v1187_v55 }
 0x138   : > { %2169 = vmatmul.bf16.gmra.mxu1 %v2818_v18 }
 0x139   : > { %1327 = vmatmul.bf16.gmra.mxu2 %v785_v58  ;;  %v577_v58 = vunpack.c.2.s8 %v489_v24 }
 0x13a   : > { %1416 = vmatmul.bf16.gmra.mxu3 %v786_v59  ;;  %v1210_v59 = vadd.f32 %v3564_v50, %v1120_v60 }
 0x13b   : > { %v705_v5 = vcvt.s32.f32 %v577_v58  ;;  %v3592_v15 = vpop.f32.mrf.mxu1 }
 0x13c   : > { %v1190_v62 = vpop.f32.mrf.mxu2 }
 0x13d   : > { %v1279_v0 = vpop.f32.mrf.mxu3 }
 0x13e   : > { %v3570_v3 = vadd.f32 %v1279_v0, %v1190_v62  ;;  %v581_v62 = vunpack.c.3.s8 %v489_v24  ;;  %v578_v0 = vunpack.c.2.s8 %v490_v25  ;;  %v1606_v25 = vpop.permute.xlu0 %1605 }
 0x140   : > { %v709_v7 = vcvt.s32.f32 %v581_v62  ;;  %v706_v9 = vcvt.s32.f32 %v578_v0  ;;  %v2819_v0 = vld [vmem:[%s3460_s5 + $0x18] sm:$0xff] }
 0x143   : > { %v3597_v35 = vpop.f32.mrf.mxu1 }
 0x144   : > { %v1192_v19 = vpop.f32.mrf.mxu2 }
 0x145   : > { %v1281_v20 = vpop.f32.mrf.mxu3 }
 0x146   : > { %v3575_v21 = vadd.f32 %v1281_v20, %v1192_v19 }
 0x148   : > { %2174 = vmatmul.bf16.gmra.mxu1 %v2819_v0 }
 0x149   : > { %1332 = vmatmul.bf16.gmra.mxu2 %v789_v22  ;;  %v797_v22 = vpack.c.bf16 %v709_v7, %v705_v5  ;;  %v1135_v7 = vpop.f32.mrf.mxu0 }
 0x14a   : > { %1421 = vmatmul.bf16.gmra.mxu3 %v790_v23  ;;  %v798_v23 = vpack.c.bf16 %v710_v11, %v706_v9 }
 0x14b   : > { %v3601_v62 = vpop.f32.mrf.mxu1 }
 0x14c   : > { %v1195_v27 = vpop.f32.mrf.mxu2 }
 0x14d   : > { %v1284_v28 = vpop.f32.mrf.mxu3 }
 0x14e   : > { %v3581_v32 = vadd.f32 %v1284_v28, %v1195_v27 }
 0x154   : > { %v1197_v47 = vpop.f32.mrf.mxu2 }
 0x155   : > { %v1286_v48 = vpop.f32.mrf.mxu3 }
 0x156   : > { %v3586_v49 = vadd.f32 %v1286_v48, %v1197_v47  ;;  %v590_v47 = vunpack.c.1.s8 %v494_v61  ;;  %v1611_v48 = vpop.permute.xlu1 %1610 }
 0x158   : > { %v718_v58 = vcvt.s32.f32 %v590_v47 }
 0x159   : > { %1337 = vmatmul.bf16.gmra.mxu2 %v793_v51  ;;  %v713_v51 = vcvt.s32.f32 %v585_v39 }
 0x15a   : > { %1426 = vmatmul.bf16.gmra.mxu3 %v794_v52 }
 0x15c   : > { %v1298_v55 = vpop.f32.mrf.mxu2 }
 0x15d   : > { %v1387_v56 = vpop.f32.mrf.mxu3  ;;  %v1299_v6 = vadd.f32 %v1298_v55, %v1210_v59  ;;  %v717_v55 = vcvt.s32.f32 %v589_v42  ;;  %v1217_v59 = vadd.f32 %v3579_v26, %v1127_v53  ;;  %v593_v53 = vunpack.c.2.s8 %v493_v30  ;;  %v2820_v42 = vld [vmem:[%s3460_s5 + $0x20] sm:$0xff] }
 0x15e   : > { %v1616_v11 = vpop.permute.xlu1 %1615  ;;  %2179 = vmatmul.bf16.gmra.mxu1 %v2820_v42 }
 0x15f   : > { %v1388_v50 = vadd.f32 %v1387_v56, %v1299_v6  ;;  %v714_v56 = vcvt.s32.f32 %v586_v46  ;;  %v801_v17 = vpack.c.bf16 %v717_v55, %v713_v51 }
 0x161   : > { %v1758_v27 = vmul.f32 %v1601_v4, %v1388_v50  ;;  %v802_v37 = vpack.c.bf16 %v718_v58, %v714_v56  ;;  %v1220_v50 = vadd.f32 %v3583_v45, %v1130_v12 }
 0x164   : > { %v1300_v19 = vpop.f32.mrf.mxu2 }
 0x165   : > { %v1389_v20 = vpop.f32.mrf.mxu3  ;;  %v1301_v60 = vadd.f32 %v1300_v19, %v1212_v14 }
 0x167   : > { %v1390_v24 = vadd.f32 %v1389_v20, %v1301_v60  ;;  %v597_v60 = vunpack.c.3.s8 %v493_v30 }
 0x169   : > { %v1759_v28 = vmul.f32 %v1606_v25, %v1390_v24  ;;  %1342 = vmatmul.bf16.gmra.mxu2 %v797_v22  ;;  %v594_v22 = vunpack.c.2.s8 %v494_v61  ;;  %v3605_v24 = vpop.f32.mrf.mxu1  ;;  %v1621_v25 = vpop.permute.xlu2 %1620 }
 0x16a   : > { %1431 = vmatmul.bf16.gmra.mxu3 %v798_v23  ;;  %v598_v23 = vunpack.c.3.s8 %v494_v61 }
 0x16b   : > { %v1790_v16 = vpack.c.bf16 %v1759_v28, %v1758_v27  ;;  %v1137_v27 = vpop.f32.mrf.mxu0  ;;  %v721_v28 = vcvt.s32.f32 %v593_v53 }
 0x16c   : > { %v1303_v36 = vpop.f32.mrf.mxu2  ;;  %v726_v39 = vcvt.s32.f32 %v598_v23 }
 0x16d   : > { %v1392_v38 = vpop.f32.mrf.mxu3  ;;  %1926 = vmatmul.bf16.vlgmr.msrb.gmra.mxu0 %v1790_v16  ;;  %v1304_v52 = vadd.f32 %v1303_v36, %v1215_v40  ;;  %v725_v36 = vcvt.s32.f32 %v597_v60  ;;  %v1222_v40 = vadd.f32 %v3588_v54, %v1132_v33  ;;  %v497_v54 = vld [vmem:[%s3478_s18 + $0xd0] sm:$0xff]  ;;  %v498_v33 = vld [vmem:[%s3478_s18 + $0xd8] sm:$0xff] }
 0x16f   : > { %v1393_v5 = vadd.f32 %v1392_v38, %v1304_v52  ;;  %v722_v38 = vcvt.s32.f32 %v594_v22  ;;  %v805_v47 = vpack.c.bf16 %v725_v36, %v721_v28  ;;  %v1636_v36 = vpop.permute.xlu1 %1635 }
 0x171   : > { %v1760_v14 = vmul.f32 %v1611_v48, %v1393_v5  ;;  %v806_v61 = vpack.c.bf16 %v726_v39, %v722_v38  ;;  %v3609_v51 = vpop.f32.mrf.mxu1  ;;  %v1626_v52 = vpop.permute.xlu2 %1625  ;;  %v1225_v5 = vadd.f32 %v3592_v15, %v1135_v7 }
 0x173   : > { %v1140_v58 = vpop.f32.mrf.mxu0 }
 0x174   : > { %v1305_v1 = vpop.f32.mrf.mxu2 }
 0x175   : > { %v1394_v4 = vpop.f32.mrf.mxu3  ;;  %v1306_v6 = vadd.f32 %v1305_v1, %v1217_v59 }
 0x177   : > { %v1395_v9 = vadd.f32 %v1394_v4, %v1306_v6  ;;  %v601_v4 = vunpack.c.0.s8 %v497_v54  ;;  %v605_v6 = vunpack.c.1.s8 %v497_v54 }
 0x179   : > { %1347 = vmatmul.bf16.gmra.mxu2 %v801_v17  ;;  %v1761_v18 = vmul.f32 %v1616_v11, %v1395_v9  ;;  %v602_v17 = vunpack.c.0.s8 %v498_v33  ;;  %v729_v9 = vcvt.s32.f32 %v601_v4 }
 0x17a   : > { %1436 = vmatmul.bf16.gmra.mxu3 %v802_v37  ;;  %v606_v37 = vunpack.c.1.s8 %v498_v33 }
 0x17b   : > { %v1791_v19 = vpack.c.bf16 %v1761_v18, %v1760_v14  ;;  %v733_v14 = vcvt.s32.f32 %v605_v6  ;;  %v730_v18 = vcvt.s32.f32 %v602_v17  ;;  %v1142_v53 = vpop.f32.mrf.mxu0 }
 0x17c   : > { %v1308_v20 = vpop.f32.mrf.mxu2 }
 0x17d   : > { %v1397_v26 = vpop.f32.mrf.mxu3  ;;  %1931 = vmatmul.bf16.gmra.mxu0 %v1791_v19  ;;  %v1309_v16 = vadd.f32 %v1308_v20, %v1220_v50  ;;  %v734_v19 = vcvt.s32.f32 %v606_v37  ;;  %v3614_v20 = vpop.f32.mrf.mxu1  ;;  %v2821_v50 = vld [vmem:[%s3460_s5 + $0x28] sm:$0xff]  ;;  %v809_v15 = vpack.c.bf16 %v733_v14, %v729_v9 }
 0x17e   : > { %2184 = vmatmul.bf16.gmra.mxu1 %v2821_v50 }
 0x17f   : > { %v1398_v12 = vadd.f32 %v1397_v26, %v1309_v16  ;;  %v1227_v26 = vadd.f32 %v3597_v35, %v1137_v27  ;;  %v810_v7 = vpack.c.bf16 %v734_v19, %v730_v18  ;;  %v1631_v16 = vpop.permute.xlu0 %1630  ;;  %v502_v19 = vld [vmem:[%s3478_s18 + $0xf8] sm:$0xff] }
 0x181   : > { %v1762_v55 = vmul.f32 %v1621_v25, %v1398_v12 }
 0x183   : > { %v1145_v12 = vpop.f32.mrf.mxu0 }
 0x184   : > { %v1310_v46 = vpop.f32.mrf.mxu2 }
 0x185   : > { %v1399_v45 = vpop.f32.mrf.mxu3  ;;  %v1311_v30 = vadd.f32 %v1310_v46, %v1222_v40  ;;  %v3618_v42 = vpop.f32.mrf.mxu1  ;;  %v609_v46 = vunpack.c.2.s8 %v497_v54 }
 0x187   : > { %v1400_v48 = vadd.f32 %v1399_v45, %v1311_v30  ;;  %v1230_v45 = vadd.f32 %v3601_v62, %v1140_v58  ;;  %v613_v30 = vunpack.c.3.s8 %v497_v54  ;;  %v1646_v9 = vpop.permute.xlu0 %1645 }
 0x189   : > { %1352 = vmatmul.bf16.gmra.mxu2 %v805_v47  ;;  %v1763_v56 = vmul.f32 %v1626_v52, %v1400_v48  ;;  %v610_v47 = vunpack.c.2.s8 %v498_v33  ;;  %v737_v48 = vcvt.s32.f32 %v609_v46 }
 0x18a   : > { %1441 = vmatmul.bf16.gmra.mxu3 %v806_v61  ;;  %v614_v61 = vunpack.c.3.s8 %v498_v33 }
 0x18b   : > { %v1792_v59 = vpack.c.bf16 %v1763_v56, %v1762_v55  ;;  %v741_v55 = vcvt.s32.f32 %v613_v30  ;;  %v738_v56 = vcvt.s32.f32 %v610_v47  ;;  %v1147_v33 = vpop.f32.mrf.mxu0 }
 0x18c   : > { %v1313_v0 = vpop.f32.mrf.mxu2 }
 0x18d   : > { %v1402_v1 = vpop.f32.mrf.mxu3  ;;  %1936 = vmatmul.bf16.gmra.mxu0 %v1792_v59  ;;  %v1314_v11 = vadd.f32 %v1313_v0, %v1225_v5  ;;  %v742_v59 = vcvt.s32.f32 %v614_v61  ;;  %v1232_v0 = vadd.f32 %v3605_v24, %v1142_v53  ;;  %v813_v62 = vpack.c.bf16 %v741_v55, %v737_v48  ;;  %v1241_v54 = vpop.f32.mrf.mxu1  ;;  %v501_v24 = vld [vmem:[%s3478_s18 + $0xf0] sm:$0xff] }
 0x18e   : > { %v1651_v48 = vpop.permute.xlu1 %1650 }
 0x18f   : > { %v1403_v23 = vadd.f32 %v1402_v1, %v1314_v11  ;;  %v2822_v1 = vld [vmem:[%s3460_s5 + $0x30] sm:$0xff]  ;;  %v814_v58 = vpack.c.bf16 %v742_v59, %v738_v56  ;;  %v1641_v11 = vpop.permute.xlu2 %1640 }
 0x190   : > { %2189 = vmatmul.bf16.gmra.mxu1 %v2822_v1 }
 0x191   : > { %v1764_v38 = vmul.f32 %v1631_v16, %v1403_v23  ;;  %v621_v23 = vunpack.c.1.s8 %v501_v24 }
 0x194   : > { %v1315_v60 = vpop.f32.mrf.mxu2 }
 0x195   : > { %v1404_v22 = vpop.f32.mrf.mxu3  ;;  %v1316_v25 = vadd.f32 %v1315_v60, %v1227_v26  ;;  %v617_v60 = vunpack.c.0.s8 %v501_v24 }
 0x197   : > { %v1405_v28 = vadd.f32 %v1404_v22, %v1316_v25  ;;  %v1235_v22 = vadd.f32 %v3609_v51, %v1145_v12  ;;  %v618_v25 = vunpack.c.0.s8 %v502_v19 }
 0x199   : > { %1357 = vmatmul.bf16.gmra.mxu2 %v809_v15  ;;  %v1765_v39 = vmul.f32 %v1636_v36, %v1405_v28  ;;  %v622_v15 = vunpack.c.1.s8 %v502_v19  ;;  %v1244_v28 = vpop.f32.mrf.mxu1  ;;  %v1150_v36 = vpop.f32.mrf.mxu0 }
 0x19a   : > { %1446 = vmatmul.bf16.gmra.mxu3 %v810_v7  ;;  %v745_v7 = vcvt.s32.f32 %v617_v60 }
 0x19b   : > { %v1793_v40 = vpack.c.bf16 %v1765_v39, %v1764_v38  ;;  %v749_v38 = vcvt.s32.f32 %v621_v23  ;;  %v746_v39 = vcvt.s32.f32 %v618_v25 }
 0x19c   : > { %v1318_v35 = vpop.f32.mrf.mxu2 }
 0x19d   : > { %v1407_v27 = vpop.f32.mrf.mxu3  ;;  %1941 = vmatmul.bf16.gmra.mxu0 %v1793_v40  ;;  %v1319_v52 = vadd.f32 %v1318_v35, %v1230_v45  ;;  %v750_v40 = vcvt.s32.f32 %v622_v15  ;;  %v1237_v35 = vadd.f32 %v3614_v20, %v1147_v33  ;;  %v817_v61 = vpack.c.bf16 %v749_v38, %v745_v7  ;;  %v1661_v7 = vpop.permute.xlu0 %1660 }
 0x19f   : > { %v1408_v6 = vadd.f32 %v1407_v27, %v1319_v52  ;;  %v2823_v27 = vld [vmem:[%s3460_s5 + $0x38] sm:$0xff]  ;;  %v818_v51 = vpack.c.bf16 %v750_v40, %v746_v39  ;;  %v1656_v52 = vpop.permute.xlu2 %1655 }
 0x1a0   : > { %2194 = vmatmul.bf16.gmra.mxu1 %v2823_v27 }
 0x1a1   : > { %v1766_v14 = vmul.f32 %v1641_v11, %v1408_v6  ;;  %v1246_v59 = vpop.f32.mrf.mxu1  ;;  %v1240_v6 = vadd.f32 %v3618_v42, %v1150_v36 }
 0x1a4   : > { %v1320_v4 = vpop.f32.mrf.mxu2 }
 0x1a5   : > { %v1409_v5 = vpop.f32.mrf.mxu3  ;;  %v1321_v17 = vadd.f32 %v1320_v4, %v1232_v0  ;;  %v1152_v0 = vpop.f32.mrf.mxu0 }
 0x1a7   : > { %v1410_v37 = vadd.f32 %v1409_v5, %v1321_v17  ;;  %v625_v5 = vunpack.c.2.s8 %v501_v24  ;;  %v629_v17 = vunpack.c.3.s8 %v501_v24 }
 0x1a9   : > { %v1767_v18 = vmul.f32 %v1646_v9, %v1410_v37  ;;  %1362 = vmatmul.bf16.gmra.mxu2 %v813_v62  ;;  %v626_v62 = vunpack.c.2.s8 %v502_v19  ;;  %v753_v37 = vcvt.s32.f32 %v625_v5  ;;  %v757_v9 = vcvt.s32.f32 %v629_v17  ;;  %v2826_v17 = vld [vmem:[%s3460_s5 + $0x50] sm:$0xff] }
 0x1aa   : > { %1451 = vmatmul.bf16.gmra.mxu3 %v814_v58  ;;  %v630_v58 = vunpack.c.3.s8 %v502_v19  ;;  %v1666_v19 = vpop.permute.xlu1 %1665 }
 0x1ab   : > { %v1794_v26 = vpack.c.bf16 %v1767_v18, %v1766_v14  ;;  %v754_v11 = vcvt.s32.f32 %v626_v62  ;;  %v3629_v18 = vpop.f32.mrf.mxu1  ;;  %v821_v25 = vpack.c.bf16 %v757_v9, %v753_v37 }
 0x1ac   : > { %v1323_v53 = vpop.f32.mrf.mxu2  ;;  %v758_v14 = vcvt.s32.f32 %v630_v58 }
 0x1ad   : > { %v1412_v50 = vpop.f32.mrf.mxu3  ;;  %1946 = vmatmul.bf16.gmra.mxu0 %v1794_v26  ;;  %v1324_v16 = vadd.f32 %v1323_v53, %v1235_v22  ;;  %v1242_v26 = vadd.f32 %v1241_v54, %v1152_v0  ;;  %v2824_v53 = vld [vmem:[%s3460_s5 + $0x40] sm:$0xff]  ;;  %v1155_v42 = vpop.f32.mrf.mxu0 }
 0x1ae   : > { %v822_v15 = vpack.c.bf16 %v758_v14, %v754_v11 }
 0x1af   : > { %v1413_v30 = vadd.f32 %v1412_v50, %v1324_v16 }
 0x1b0   : > { %2199 = vmatmul.bf16.gmra.mxu1 %v2824_v53 }
 0x1b1   : > { %v1768_v55 = vmul.f32 %v1651_v48, %v1413_v30 }
 0x1b2   : > { %v1681_v11 = vpop.permute.xlu1 %1680 }
 0x1b3   : > { %v2162_v38 = vpop.f32.mrf.mxu1 }
 0x1b4   : > { %v1325_v46 = vpop.f32.mrf.mxu2 }
 0x1b5   : > { %v1414_v45 = vpop.f32.mrf.mxu3  ;;  %v1326_v47 = vadd.f32 %v1325_v46, %v1237_v35  ;;  %v1245_v35 = vadd.f32 %v1244_v28, %v1155_v42  ;;  %v1157_v27 = vpop.f32.mrf.mxu0 }
 0x1b6   : > { %v1247_v30 = vadd.f32 %v1246_v59, %v1157_v27 }
 0x1b7   : > { %v1415_v12 = vadd.f32 %v1414_v45, %v1326_v47  ;;  %v2825_v47 = vld [vmem:[%s3460_s5 + $0x48] sm:$0xff] }
 0x1b9   : > { %v1769_v56 = vmul.f32 %v1656_v52, %v1415_v12  ;;  %1367 = vmatmul.bf16.gmra.mxu2 %v817_v61 }
 0x1ba   : > { %1456 = vmatmul.bf16.gmra.mxu3 %v818_v51 }
 0x1bb   : > { %v1795_v1 = vpack.c.bf16 %v1769_v56, %v1768_v55  ;;  %v3632_v45 = vpop.f32.mrf.mxu1  ;;  %v1676_v55 = vpop.permute.xlu0 %1675 }
 0x1bc   : > { %v1328_v20 = vpop.f32.mrf.mxu2  ;;  %v1671_v56 = vpop.permute.xlu2 %1670 }
 0x1bd   : > { %v1417_v4 = vpop.f32.mrf.mxu3  ;;  %1951 = vmatmul.bf16.gmra.mxu0 %v1795_v1  ;;  %v1329_v33 = vadd.f32 %v1328_v20, %v1240_v6 }
 0x1bf   : > { %v1418_v22 = vadd.f32 %v1417_v4, %v1329_v33 }
 0x1c0   : > { %2204 = vmatmul.bf16.gmra.mxu1 %v2825_v47 }
 0x1c1   : > { %v1770_v16 = vmul.f32 %v1661_v7, %v1418_v22 }
 0x1c3   : > { %v2167_v20 = vpop.f32.mrf.mxu1 }
 0x1c4   : > { %v1330_v50 = vpop.f32.mrf.mxu2  ;;  %v1686_v14 = vpop.permute.xlu2 %1685 }
 0x1c5   : > { %v1419_v60 = vpop.f32.mrf.mxu3  ;;  %v1331_v23 = vadd.f32 %v1330_v50, %v1242_v26 }
 0x1c7   : > { %v1420_v24 = vadd.f32 %v1419_v60, %v1331_v23 }
 0x1c9   : > { %v1771_v36 = vmul.f32 %v1666_v19, %v1420_v24  ;;  %1372 = vmatmul.bf16.gmra.mxu2 %v821_v25  ;;  %v2827_v19 = vld [vmem:[%s3460_s5 + $0x58] sm:$0xff] }
 0x1ca   : > { %1461 = vmatmul.bf16.gmra.mxu3 %v822_v15 }
 0x1cb   : > { %v1796_v39 = vpack.c.bf16 %v1771_v36, %v1770_v16  ;;  %v3636_v59 = vpop.f32.mrf.mxu1 }
 0x1cc   : > { %v1333_v54 = vpop.f32.mrf.mxu2 }
 0x1cd   : > { %v1422_v40 = vpop.f32.mrf.mxu3  ;;  %1956 = vmatmul.bf16.gmra.mxu0 %v1796_v39  ;;  %v1334_v46 = vadd.f32 %v1333_v54, %v1245_v35 }
 0x1cf   : > { %v1423_v12 = vadd.f32 %v1422_v40, %v1334_v46  ;;  %v1691_v46 = vpop.permute.xlu0 %1690 }
 0x1d0   : > { %2209 = vmatmul.bf16.gmra.mxu1 %v2826_v17 }
 0x1d1   : > { %v1772_v0 = vmul.f32 %v1671_v56, %v1423_v12 }
 0x1d3   : > { %v3640_v60 = vpop.f32.mrf.mxu1 }
 0x1d4   : > { %v1335_v61 = vpop.f32.mrf.mxu2 }
 0x1d5   : > { %v1424_v51 = vpop.f32.mrf.mxu3  ;;  %v1336_v48 = vadd.f32 %v1335_v61, %v1247_v30 }
 0x1d7   : > { %v1425_v52 = vadd.f32 %v1424_v51, %v1336_v48 }
 0x1d9   : > { %v1773_v1 = vmul.f32 %v1676_v55, %v1425_v52 }
 0x1db   : > { %v1797_v28 = vpack.c.bf16 %v1773_v1, %v1772_v0  ;;  %v3649_v24 = vpop.f32.mrf.mxu1  ;;  %v2828_v1 = vld [vmem:[%s3460_s5 + $0x60] sm:$0xff] }
 0x1dc   : > { %v1338_v4 = vpop.f32.mrf.mxu2 }
 0x1dd   : > { %v1427_v5 = vpop.f32.mrf.mxu3  ;;  %1961 = vmatmul.bf16.gmra.mxu0 %v1797_v28  ;;  %v1339_v6 = vadd.f32 %v1338_v4, %v3525_v8 }
 0x1df   : > { %v1428_v37 = vadd.f32 %v1427_v5, %v1339_v6 }
 0x1e0   : > { %2214 = vmatmul.bf16.gmra.mxu1 %v2827_v19 }
 0x1e1   : > { %v1774_v26 = vmul.f32 %v1681_v11, %v1428_v37  ;;  %v1706_v37 = vpop.permute.xlu0 %1705 }
 0x1e3   : > { %v2177_v61 = vpop.f32.mrf.mxu1 }
 0x1e4   : > { %v1340_v62 = vpop.f32.mrf.mxu2 }
 0x1e5   : > { %v1429_v58 = vpop.f32.mrf.mxu3  ;;  %v1341_v33 = vadd.f32 %v1340_v62, %v3529_v29  ;;  %v3646_v29 = vld [vmem:[%s3779_s6] ss:$0 sm:$0xff] }
 0x1e7   : > { %v1430_v9 = vadd.f32 %v1429_v58, %v1341_v33 }
 0x1e9   : > { %v1775_v53 = vmul.f32 %v1686_v14, %v1430_v9 }
 0x1ea   : > { %v1927_v50 = vpop.f32.mrf.mxu0 }
 0x1eb   : > { %v1798_v22 = vpack.c.bf16 %v1775_v53, %v1774_v26  ;;  %v2161_v25 = vadd.f32 %v3629_v18, %v1927_v50  ;;  %v3661_v56 = vpop.f32.mrf.mxu1 }
 0x1ec   : > { %v1343_v8 = vpop.f32.mrf.mxu2 }
 0x1ed   : > { %v1432_v23 = vpop.f32.mrf.mxu3  ;;  %1966 = vmatmul.bf16.gmra.mxu0 %v1798_v22  ;;  %v1344_v15 = vadd.f32 %v1343_v8, %v3534_v41  ;;  %v2244_v39 = vadd.f32 %v3646_v29, %v2161_v25  ;;  %v1696_v41 = vpop.permute.xlu1 %1695  ;;  %v2829_v25 = vld [vmem:[%s3460_s5 + $0x68] sm:$0xff] }
 0x1ef   : > { %v1433_v54 = vadd.f32 %v1432_v23, %v1344_v15 }
 0x1f0   : > { %2219 = vmatmul.bf16.gmra.mxu1 %v2828_v1 }
 0x1f1   : > { %v1776_v30 = vmul.f32 %v1691_v46, %v1433_v54 }
 0x1f2   : > { %v1929_v42 = vpop.f32.mrf.mxu0 }
 0x1f3   : > { %v2163_v7 = vadd.f32 %v2162_v38, %v1929_v42  ;;  %v2182_v11 = vpop.f32.mrf.mxu1 }
 0x1f4   : > { %v1345_v16 = vpop.f32.mrf.mxu2 }
 0x1f5   : > { %v1434_v36 = vpop.f32.mrf.mxu3  ;;  %v2245_v18 = vadd.f32 %v3646_v29, %v2163_v7  ;;  %v1346_v40 = vadd.f32 %v1345_v16, %v3539_v63 }
 0x1f7   : > { %v2852_v35 = vpack.c.bf16 %v2245_v18, %v2244_v39  ;;  %v1435_v27 = vadd.f32 %v1434_v36, %v1346_v40 }
 0x1f9   : > { %2853 = vst [vmem:[%s3656_s23] sm:$0xff] %v2852_v35   ;;  %v1777_v38 = vmul.f32 %v1696_v41, %v1435_v27 }
 0x1fa   : > { %v1932_v47 = vpop.f32.mrf.mxu0 }
 0x1fb   : > { %v1799_v51 = vpack.c.bf16 %v1777_v38, %v1776_v30  ;;  %v2166_v63 = vadd.f32 %v3632_v45, %v1932_v47  ;;  %v3670_v8 = vpop.f32.mrf.mxu1 }
 0x1fc   : > { %v1348_v12 = vpop.f32.mrf.mxu2 }
 0x1fd   : > { %v1437_v48 = vpop.f32.mrf.mxu3  ;;  %1971 = vmatmul.bf16.gmra.mxu0 %v1799_v51  ;;  %v1349_v52 = vadd.f32 %v1348_v12, %v3542_v10  ;;  %v2246_v5 = vadd.f32 %v3646_v29, %v2166_v63  ;;  %v1701_v10 = vpop.permute.xlu2 %1700  ;;  %v2830_v12 = vld [vmem:[%s3460_s5 + $0x70] sm:$0xff] }
 0x1ff   : > { %v1438_v6 = vadd.f32 %v1437_v48, %v1349_v52 }
 0x200   : > { %2224 = vmatmul.bf16.gmra.mxu1 %v2829_v25 }
 0x201   : > { %v1778_v33 = vmul.f32 %v1701_v10, %v1438_v6 }
 0x202   : > { %v1934_v55 = vpop.f32.mrf.mxu0 }
 0x203   : > { %v2168_v0 = vadd.f32 %v2167_v20, %v1934_v55  ;;  %v2187_v35 = vpop.f32.mrf.mxu1 }
 0x204   : > { %v1350_v28 = vpop.f32.mrf.mxu2 }
 0x205   : > { %v1439_v4 = vpop.f32.mrf.mxu3  ;;  %v2247_v17 = vadd.f32 %v3646_v29, %v2168_v0  ;;  %v1351_v62 = vadd.f32 %v1350_v28, %v3545_v31  ;;  %v1716_v54 = vpop.permute.xlu2 %1715 }
 0x207   : > { %v2857_v58 = vpack.c.bf16 %v2247_v17, %v2246_v5  ;;  %v1440_v45 = vadd.f32 %v1439_v4, %v1351_v62 }
 0x209   : > { %2929 = vst [vmem:[%s3656_s23 + $0x8] sm:$0xff] %v2857_v58   ;;  %v1779_v9 = vmul.f32 %v1706_v37, %v1440_v45 }
 0x20a   : > { %v1937_v20 = vpop.f32.mrf.mxu0 }
 0x20b   : > { %v1800_v14 = vpack.c.bf16 %v1779_v9, %v1778_v33  ;;  %v2171_v50 = vadd.f32 %v3636_v59, %v1937_v20  ;;  %v2831_v9 = vld [vmem:[%s3460_s5 + $0x78] sm:$0xff]  ;;  %s2352_s5 = scalar_lea.hbm %s3780_s7, %s2848_s4 }
 0x20c   : > { %v1353_v26 = vpop.f32.mrf.mxu2  ;;  %s2355_s30 = sshll.u32 %s2352_s5, 4  ;;  %s2356_s30 = int_to_ptr.hbm [resolvable:$true] %s2355_s30 }
 0x20d   : > { %v1442_v53 = vpop.f32.mrf.mxu3  ;;  %1976 = vmatmul.bf16.gmra.mxu0 %v1800_v14  ;;  %v1354_v22 = vadd.f32 %v1353_v26, %v3550_v44  ;;  %v2248_v7 = vadd.f32 %v3646_v29, %v2171_v50  ;;  %v1711_v44 = vpop.permute.xlu1 %1710  ;;  %s3196_s9 = sshra.s32 %s2356_s30, 4  ;;  %s3197_s9 = int_to_ptr.hbm [resolvable:$true] %s3196_s9 }
 0x20e   : > { %v3680_v51 = vpop.f32.mrf.mxu1  ;;  %s3198_s11 = scalar_lea.hbm %s3197_s9, 128  ;;  %p3203_p13 = scmp.lt.s32.totalorder %s3197_s9, %s3780_s7 }
 0x20f   : > { %v1443_v19 = vadd.f32 %v1442_v53, %v1354_v22  ;;  %p3199_p8 = scmp.ne.s32.totalorder %s3197_s9, %s3198_s11  ;;  %p3204_p0 = scmp.lt.s32.totalorder %s3202_s17, %s3198_s11 }
 0x210   : > { %2229 = vmatmul.bf16.gmra.mxu1 %v2830_v12 }
 0x211   : > { %v1780_v18 = vmul.f32 %v1711_v44, %v1443_v19  ;;  %p3200_p11 = pnand %p3199_p8, %p3422_p3  ;;  %p3205_p5 = por %p3204_p0, %p3203_p13 }
 0x212   : > { %v1939_v31 = vpop.f32.mrf.mxu0 }
 0x213   : > { %v2173_v23 = vadd.f32 %v3640_v60, %v1939_v31  ;;  %p3201_p12 = pneg %p3200_p11 }
 0x214   : > { %v1355_v15 = vpop.f32.mrf.mxu2 }
 0x215   : > { %v1444_v42 = vpop.f32.mrf.mxu3  ;;  %v2249_v16 = vadd.f32 %v3646_v29, %v2173_v23  ;;  %v1356_v36 = vadd.f32 %v1355_v15, %v3554_v2  ;;  %v1726_v4 = vpop.permute.xlu1 %1725  ;;  %p3206_p7 = pnand %p3205_p5, %p3201_p12 }
 0x216   : > { %v2192_v45 = vpop.f32.mrf.mxu1  ;;  %v1731_v15 = vpop.permute.xlu2 %1730 }
 0x217   : > { %v2862_v59 = vpack.c.bf16 %v2249_v16, %v2248_v7  ;;  %v1445_v39 = vadd.f32 %v1444_v42, %v1356_v36 }
 0x219   : > { %2930 = vst [vmem:[%s3656_s23 + $0x10] sm:$0xff] %v2862_v59   ;;  %v1781_v40 = vmul.f32 %v1716_v54, %v1445_v39 }
 0x21a   : > { %v1942_v60 = vpop.f32.mrf.mxu0 }
 0x21b   : > { %v1801_v27 = vpack.c.bf16 %v1781_v40, %v1780_v18  ;;  %v2176_v30 = vadd.f32 %v3649_v24, %v1942_v60 }
 0x21c   : > { %v1358_v46 = vpop.f32.mrf.mxu2 }
 0x21d   : > { %v1447_v41 = vpop.f32.mrf.mxu3  ;;  %1981 = vmatmul.bf16.gmra.mxu0 %v1801_v27  ;;  %v1359_v38 = vadd.f32 %v1358_v46, %v3556_v13  ;;  %v2250_v52 = vadd.f32 %v3646_v29, %v2176_v30  ;;  %v1721_v13 = vpop.permute.xlu0 %1720 }
 0x21e   : > { %v2195_v25 = vpop.f32.mrf.mxu1 }
 0x21f   : > { %v1448_v55 = vadd.f32 %v1447_v41, %v1359_v38  ;;  %v1741_v38 = vpop.permute.xlu1 %1740 }
 0x220   : > { %2234 = vmatmul.bf16.gmra.mxu1 %v2831_v9 }
 0x221   : > { %v1782_v5 = vmul.f32 %v1721_v13, %v1448_v55 }
 0x222   : > { %v1944_v2 = vpop.f32.mrf.mxu0 }
 0x223   : > { %v2178_v47 = vadd.f32 %v2177_v61, %v1944_v2  ;;  %v1746_v2 = vpop.permute.xlu2 %1745 }
 0x224   : > { %v1360_v48 = vpop.f32.mrf.mxu2 }
 0x225   : > { %v1449_v63 = vpop.f32.mrf.mxu3  ;;  %v2251_v0 = vadd.f32 %v3646_v29, %v2178_v47  ;;  %v1361_v1 = vadd.f32 %v1360_v48, %v3558_v34 }
 0x227   : > { %v2867_v28 = vpack.c.bf16 %v2251_v0, %v2250_v52  ;;  %v1450_v24 = vadd.f32 %v1449_v63, %v1361_v1 }
 0x229   : > { %2931 = vst [vmem:[%s3656_s23 + $0x18] sm:$0xff] %v2867_v28   ;;  %v1783_v61 = vmul.f32 %v1726_v4, %v1450_v24 }
 0x22a   : > { %v1947_v6 = vpop.f32.mrf.mxu0 }
 0x22b   : > { %v1802_v17 = vpack.c.bf16 %v1783_v61, %v1782_v5  ;;  %v2181_v37 = vadd.f32 %v3661_v56, %v1947_v6  ;;  %v1736_v56 = vpop.permute.xlu0 %1735 }
 0x22c   : > { %v1363_v62 = vpop.f32.mrf.mxu2 }
 0x22d   : > { %v1452_v58 = vpop.f32.mrf.mxu3  ;;  %1986 = vmatmul.bf16.gmra.mxu0 %v1802_v17  ;;  %v1364_v10 = vadd.f32 %v1363_v62, %v3562_v43  ;;  %v2252_v26 = vadd.f32 %v3646_v29, %v2181_v37 }
 0x22f   : > { %v1453_v53 = vadd.f32 %v1452_v58, %v1364_v10 }
 0x231   : > { %v1784_v43 = vmul.f32 %v1731_v15, %v1453_v53 }
 0x232   : > { %v1949_v34 = vpop.f32.mrf.mxu0 }
 0x233   : > { %v2183_v33 = vadd.f32 %v2182_v11, %v1949_v34  ;;  %v1751_v62 = vpop.permute.xlu0 %1750 }
 0x234   : > { %v1365_v20 = vpop.f32.mrf.mxu2 }
 0x235   : > { %v1454_v14 = vpop.f32.mrf.mxu3  ;;  %v2253_v50 = vadd.f32 %v3646_v29, %v2183_v33  ;;  %v1366_v22 = vadd.f32 %v1365_v20, %v3566_v57  ;;  %v2197_v57 = vpop.f32.mrf.mxu1 }
 0x237   : > { %v2872_v31 = vpack.c.bf16 %v2253_v50, %v2252_v26  ;;  %v1455_v23 = vadd.f32 %v1454_v14, %v1366_v22 }
 0x239   : > { %2932 = vst [vmem:[%s3656_s23 + $0x20] sm:$0xff] %v2872_v31   ;;  %v1785_v42 = vmul.f32 %v1736_v56, %v1455_v23 }
 0x23a   : > { %v1952_v11 = vpop.f32.mrf.mxu0 }
 0x23b   : > { %v1803_v7 = vpack.c.bf16 %v1785_v42, %v1784_v43  ;;  %v2186_v36 = vadd.f32 %v3670_v8, %v1952_v11 }
 0x23c   : > { %v1368_v19 = vpop.f32.mrf.mxu2 }
 0x23d   : > { %v1457_v16 = vpop.f32.mrf.mxu3  ;;  %1991 = vmatmul.bf16.gmra.mxu0 %v1803_v7  ;;  %v1369_v59 = vadd.f32 %v1368_v19, %v3570_v3  ;;  %v2254_v40 = vadd.f32 %v3646_v29, %v2186_v36  ;;  %v2200_v48 = vpop.f32.mrf.mxu1 }
 0x23f   : > { %v1458_v60 = vadd.f32 %v1457_v16, %v1369_v59 }
 0x241   : > { %v1786_v8 = vmul.f32 %v1741_v38, %v1458_v60 }
 0x242   : > { %v1954_v39 = vpop.f32.mrf.mxu0 }
 0x243   : > { %v2188_v44 = vadd.f32 %v2187_v35, %v1954_v39 }
 0x244   : > { %v1370_v54 = vpop.f32.mrf.mxu2 }
 0x245   : > { %v1459_v18 = vpop.f32.mrf.mxu3  ;;  %v2255_v27 = vadd.f32 %v3646_v29, %v2188_v44  ;;  %v1371_v46 = vadd.f32 %v1370_v54, %v3575_v21  ;;  %v2202_v61 = vpop.f32.mrf.mxu1 }
 0x247   : > { %v2877_v41 = vpack.c.bf16 %v2255_v27, %v2254_v40  ;;  %v1460_v30 = vadd.f32 %v1459_v18, %v1371_v46 }
 0x249   : > { %2933 = vst [vmem:[%s3656_s23 + $0x28] sm:$0xff] %v2877_v41   ;;  %v1787_v47 = vmul.f32 %v1746_v2, %v1460_v30 }
 0x24a   : > { %v1957_v3 = vpop.f32.mrf.mxu0 }
 0x24b   : > { %v1804_v12 = vpack.c.bf16 %v1787_v47, %v1786_v8  ;;  %v2191_v52 = vadd.f32 %v3680_v51, %v1957_v3  ;;  %v1756_v51 = vpop.permute.xlu1 %1755 }
 0x24c   : > { %v1373_v35 = vpop.f32.mrf.mxu2 }
 0x24d   : > { %v1462_v63 = vpop.f32.mrf.mxu3  ;;  %1996 = vmatmul.bf16.gmra.mxu0 %v1804_v12  ;;  %v1374_v55 = vadd.f32 %v1373_v35, %v3581_v32  ;;  %v2256_v28 = vadd.f32 %v3646_v29, %v2191_v52  ;;  %v2205_v10 = vpop.f32.mrf.mxu1 }
 0x24f   : > { %v1463_v24 = vadd.f32 %v1462_v63, %v1374_v55 }
 0x251   : > { %v1788_v58 = vmul.f32 %v1751_v62, %v1463_v24 }
 0x252   : > { %v1959_v0 = vpop.f32.mrf.mxu0 }
 0x253   : > { %v2193_v21 = vadd.f32 %v2192_v45, %v1959_v0 }
 0x254   : > { %v1375_v1 = vpop.f32.mrf.mxu2 }
 0x255   : > { %v2257_v13 = vadd.f32 %v3646_v29, %v2193_v21  ;;  %v1376_v4 = vadd.f32 %v1375_v1, %v3586_v49  ;;  %v1464_v5 = vpop.f32.mrf.mxu3  ;;  %v2207_v53 = vpop.f32.mrf.mxu1 }
 0x257   : > { %v2882_v6 = vpack.c.bf16 %v2257_v13, %v2256_v28  ;;  %v1465_v17 = vadd.f32 %v1464_v5, %v1376_v4 }
 0x259   : > { %2934 = vst [vmem:[%s3656_s23 + $0x30] sm:$0xff] %v2882_v6   ;;  %v1789_v32 = vmul.f32 %v1756_v51, %v1465_v17 }
 0x25a   : > { %v1962_v37 = vpop.f32.mrf.mxu0 }
 0x25b   : > { %v1805_v45 = vpack.c.bf16 %v1789_v32, %v1788_v58  ;;  %v2196_v34 = vadd.f32 %v2195_v25, %v1962_v37 }
 0x25d   : > { %2001 = vmatmul.bf16.gmra.mxu0 %v1805_v45  ;;  %v2258_v49 = vadd.f32 %v3646_v29, %v2196_v34  ;;  %v2210_v23 = vpop.f32.mrf.mxu1 }
 0x262   : > { %v1964_v33 = vpop.f32.mrf.mxu0 }
 0x263   : > { %v2198_v9 = vadd.f32 %v2197_v57, %v1964_v33 }
 0x265   : > { %v2259_v20 = vadd.f32 %v3646_v29, %v2198_v9  ;;  %v2212_v42 = vpop.f32.mrf.mxu1 }
 0x267   : > { %v2887_v14 = vpack.c.bf16 %v2259_v20, %v2258_v49 }
 0x269   : > { %2935 = vst [vmem:[%s3656_s23 + $0x38] sm:$0xff] %v2887_v14  }
 0x26a   : > { %v1967_v26 = vpop.f32.mrf.mxu0 }
 0x26b   : > { %v2201_v50 = vadd.f32 %v2200_v48, %v1967_v26 }
 0x26d   : > { %v2260_v56 = vadd.f32 %v3646_v29, %v2201_v50  ;;  %v2215_v57 = vpop.f32.mrf.mxu1 }
 0x272   : > { %v1969_v22 = vpop.f32.mrf.mxu0 }
 0x273   : > { %v2203_v31 = vadd.f32 %v2202_v61, %v1969_v22 }
 0x275   : > { %v2261_v25 = vadd.f32 %v3646_v29, %v2203_v31  ;;  %v2217_v18 = vpop.f32.mrf.mxu1 }
 0x277   : > { %v2892_v15 = vpack.c.bf16 %v2261_v25, %v2260_v56 }
 0x279   : > { %2936 = vst [vmem:[%s3656_s23 + $0x40] sm:$0xff] %v2892_v15  }
 0x27a   : > { %v1972_v43 = vpop.f32.mrf.mxu0 }
 0x27b   : > { %v2206_v11 = vadd.f32 %v2205_v10, %v1972_v43 }
 0x27d   : > { %v2262_v16 = vadd.f32 %v3646_v29, %v2206_v11  ;;  %v2220_v30 = vpop.f32.mrf.mxu1 }
 0x282   : > { %v1974_v7 = vpop.f32.mrf.mxu0 }
 0x283   : > { %v2208_v19 = vadd.f32 %v2207_v53, %v1974_v7 }
 0x285   : > { %v2263_v36 = vadd.f32 %v3646_v29, %v2208_v19  ;;  %v2222_v12 = vpop.f32.mrf.mxu1 }
 0x287   : > { %v2897_v59 = vpack.c.bf16 %v2263_v36, %v2262_v16 }
 0x289   : > { %2937 = vst [vmem:[%s3656_s23 + $0x48] sm:$0xff] %v2897_v59  }
 0x28a   : > { %v1977_v39 = vpop.f32.mrf.mxu0 }
 0x28b   : > { %v2211_v44 = vadd.f32 %v2210_v23, %v1977_v39 }
 0x28d   : > { %v2264_v60 = vadd.f32 %v3646_v29, %v2211_v44  ;;  %v2225_v63 = vpop.f32.mrf.mxu1 }
 0x292   : > { %v1979_v54 = vpop.f32.mrf.mxu0 }
 0x293   : > { %v2213_v40 = vadd.f32 %v2212_v42, %v1979_v54 }
 0x295   : > { %v2265_v27 = vadd.f32 %v3646_v29, %v2213_v40  ;;  %v2227_v13 = vpop.f32.mrf.mxu1 }
 0x297   : > { %v2902_v46 = vpack.c.bf16 %v2265_v27, %v2264_v60 }
 0x299   : > { %2938 = vst [vmem:[%s3656_s23 + $0x50] sm:$0xff] %v2902_v46  }
 0x29a   : > { %v1982_v41 = vpop.f32.mrf.mxu0 }
 0x29b   : > { %v2216_v38 = vadd.f32 %v2215_v57, %v1982_v41 }
 0x29d   : > { %v2266_v47 = vadd.f32 %v3646_v29, %v2216_v38  ;;  %v2230_v6 = vpop.f32.mrf.mxu1 }
 0x2a2   : > { %v1984_v2 = vpop.f32.mrf.mxu0 }
 0x2a3   : > { %v2218_v8 = vadd.f32 %v2217_v18, %v1984_v2 }
 0x2a5   : > { %v2267_v3 = vadd.f32 %v3646_v29, %v2218_v8  ;;  %v2232_v32 = vpop.f32.mrf.mxu1 }
 0x2a7   : > { %v2907_v48 = vpack.c.bf16 %v2267_v3, %v2266_v47 }
 0x2a9   : > { %2939 = vst [vmem:[%s3656_s23 + $0x58] sm:$0xff] %v2907_v48  }
 0x2aa   : > { %v1987_v35 = vpop.f32.mrf.mxu0 }
 0x2ab   : > { %v2221_v52 = vadd.f32 %v2220_v30, %v1987_v35 }
 0x2ad   : > { %v2268_v21 = vadd.f32 %v3646_v29, %v2221_v52  ;;  %v2235_v49 = vpop.f32.mrf.mxu1 }
 0x2b2   : > { %v1989_v55 = vpop.f32.mrf.mxu0 }
 0x2b3   : > { %v2223_v0 = vadd.f32 %v2222_v12, %v1989_v55 }
 0x2b5   : > { %v2269_v1 = vadd.f32 %v3646_v29, %v2223_v0  ;;  %v2237_v26 = vpop.f32.mrf.mxu1 }
 0x2b7   : > { %v2912_v28 = vpack.c.bf16 %v2269_v1, %v2268_v21 }
 0x2b9   : > { %2940 = vst [vmem:[%s3656_s23 + $0x60] sm:$0xff] %v2912_v28  }
 0x2ba   : > { %v1992_v24 = vpop.f32.mrf.mxu0 }
 0x2bb   : > { %v2226_v4 = vadd.f32 %v2225_v63, %v1992_v24 }
 0x2bd   : > { %v2270_v17 = vadd.f32 %v3646_v29, %v2226_v4 }
 0x2c2   : > { %v1994_v5 = vpop.f32.mrf.mxu0 }
 0x2c3   : > { %v2228_v61 = vadd.f32 %v2227_v13, %v1994_v5 }
 0x2c5   : > { %v2271_v62 = vadd.f32 %v3646_v29, %v2228_v61 }
 0x2c7   : > { %v2917_v51 = vpack.c.bf16 %v2271_v62, %v2270_v17 }
 0x2c9   : > { %2941 = vst [vmem:[%s3656_s23 + $0x68] sm:$0xff] %v2917_v51  }
 0x2ca   : > { %v1997_v58 = vpop.f32.mrf.mxu0 }
 0x2cb   : > { %v2231_v37 = vadd.f32 %v2230_v6, %v1997_v58 }
 0x2cd   : > { %v2272_v34 = vadd.f32 %v3646_v29, %v2231_v37 }
 0x2d2   : > { %v1999_v45 = vpop.f32.mrf.mxu0 }
 0x2d3   : > { %v2233_v10 = vadd.f32 %v2232_v32, %v1999_v45 }
 0x2d5   : > { %v2273_v33 = vadd.f32 %v3646_v29, %v2233_v10 }
 0x2d7   : > { %v2922_v9 = vpack.c.bf16 %v2273_v33, %v2272_v34 }
 0x2d9   : > { %2942 = vst [vmem:[%s3656_s23 + $0x70] sm:$0xff] %v2922_v9  }
 0x2da   : > { %v2002_v20 = vpop.f32.mrf.mxu0 }
 0x2db   : > { %v2236_v14 = vadd.f32 %v2235_v49, %v2002_v20 }
 0x2dd   : > { %v2274_v22 = vadd.f32 %v3646_v29, %v2236_v14 }
 0x2e2   : > { %v2004_v53 = vpop.f32.mrf.mxu0 }
 0x2e3   : > { %v2238_v50 = vadd.f32 %v2237_v26, %v2004_v53 }
 0x2e5   : > { %v2275_v31 = vadd.f32 %v3646_v29, %v2238_v50 }
 0x2e7   : > { %v2927_v23 = vpack.c.bf16 %v2275_v31, %v2274_v22 }
 0x2e9   : > { %2943 = vst [vmem:[%s3656_s23 + $0x78] sm:$0xff] %v2927_v23  }
 0x2ea   : > { %3209 = shalt.err (!%p3206_p7)
}
 0x2eb   : > { %s3284_s21 = smov 64   ;;  %s3285_s15 = smov 4  }
 0x2ec   : > { %2974 = dma.vmem_to_hbm [thread:$0]  (%p3422_p3), %s2354_s10, 2048, %s2356_s30, %s2341_s27, %s3284_s21, %s3284_s21, %s3285_s15  }
 0x2ed PF: > { %s2370_s16 = sand.u32 1, %s3256_s24   ;;  %p2991_p9 = pnand %p2506_p10, %p3371_p6 }
 0x2ee   : > { %s2371_s23 = scalar_lea.sflag [#allocation5], %s2370_s16 }
 0x2ef   : > { %p2992_p2 = pneg %p2991_p9 }
 0x2f1   : > { %3251 = dma.done.wait (%p2992_p2), %s2371_s23, 2048  }
 0x2f2   : > { %3253 = vsyncadd (%p2992_p2), %s2371_s23, 4294965248  ;;  %s25_s29 = sadd.s32 1, %s3276_s29   ;;  %s3802_s20 = sld [smem:[#allocation18_spill]] }
 0x2f3   : > { %p22_p4 = scmp.ge.s32.totalorder %s25_s29, 4   ;;  %s3803_s24 = smov %s3260_s25 }
 0x2f4   : > { %s3804_s25 = smov %s3264_s26  ;;  %s3805_s26 = smov %s3436_s13 }
 0x2f5   : > { %s3806_s27 = smov %s3272_s28  ;;  %24 = sbr.rel (!%p22_p4) target bundleno = 12 (0xc), region = 121 }
 0x2f8   : > { %s3807_s28 = smov %s3802_s20 }
 0x2fa   :  { %2377 = vsyncpa [#allocation4], 1 }
 0x2fb   :  { %2379 = vsyncpa [#allocation4 + $0x1], 1 }
 0x2fc   :  { %2380 = vsyncpa [#allocation7], 1 }
 0x2fd   :  { %2382 = vsyncpa [#allocation7 + $0x1], 1 }
 0x2fe   :  { %2383 = vsyncpa [#allocation10], 1 }
 0x2ff   :  { %2384 = vsyncpa [#allocation5], 1 }
 0x300   :  { %2386 = vsyncpa [#allocation5 + $0x1], 1 }

</bundles_post_ra>
